<compile_context>
chip_gen: v7x
topology: tpu7x:2x2x1
jax: 0.10.0
libtpu: 0.0.40
codegen_flags: <defaults>
</compile_context>

<pallas_src>
import jax
import jax.numpy as jnp
from jax.experimental import pallas as pl
from jax.experimental.pallas import tpu as pltpu


def _gated_update_kernel(alpha_ref, emb_ref, nodes_out_ref, o_ref):
    # alpha_ref:     (1, TILE_N)  raw (pre-sigmoid) gate parameter, lane-dense
    # emb_ref:       (TILE_N, D)  item embedding table tile
    # nodes_out_ref: (TILE_N, D)  per-node GNN output tile
    # o_ref:         (TILE_N, D)  gated update result tile
    a_row = jax.nn.sigmoid(alpha_ref[...].astype(jnp.float32))   # (1, TILE_N), EUP
    a_col = jnp.transpose(a_row)                                  # (TILE_N, 1), XLU
    emb = emb_ref[...].astype(jnp.float32)                        # (TILE_N, D)
    nodes_out = nodes_out_ref[...].astype(jnp.float32)            # (TILE_N, D)
    # (1 - a) * emb + a * nodes_out == emb + a * (nodes_out - emb)
    o_ref[...] = (emb + a_col * (nodes_out - emb)).astype(o_ref.dtype)


def _round_up(x, m):
    return ((x + m - 1) // m) * m


def _vmem_capacity_bytes():
    """Per-core VMEM capacity; conservative fallback if the query fails."""
    try:
        return int(pltpu.get_tpu_info().vmem_capacity_bytes)
    except Exception:
        return 64 * 1024 * 1024   # v7x per-TC size: safe on every generation


def _pick_row_tile(n, d, itemsize, max_tile_rows, vmem_budget_bytes):
    """Largest multiple-of-128 row tile whose double-buffered, lane-padded
    footprint fits the budget, capped so the grid has >= 2 steps when the
    table is big enough to split (v7x dual-TensorCore sharding)."""
    d_pad = _round_up(d, 128)
    # 3 big N*D streams (emb, nodes_out, out), each double-buffered and
    # lane-padded, plus the (1, tile_n) alpha tile padded to 8 sublanes.
    bytes_per_row = 6 * d_pad * itemsize + 2 * 8 * 4
    tile_n = max(128, vmem_budget_bytes // max(bytes_per_row, 1))
    tile_n = min(tile_n, max_tile_rows)
    if n > 256:
        half = _round_up(-(-n // 2), 128)    # ceil(n/2) rounded to lane width
        if half < n:
            tile_n = min(tile_n, half)       # guarantee >= 2 grid steps
    tile_n = max(128, (tile_n // 128) * 128)
    return min(tile_n, n)                    # full extent if table is small


def global_gated_updater(alpha, item_embedding_table, nodes_output,
                         *, max_tile_rows=4096):
    """JAX wrapper matching GlobalGatedUpdater.forward(nodes, nodes_output).

    alpha:                 (items_total, 1)   nn.Parameter (pre-sigmoid)
    item_embedding_table:  (items_total, D)   Embedding weight
    nodes_output:          (items_total, D)
    returns:               (items_total, D)
    """
    n, d = item_embedding_table.shape
    itemsize = jnp.dtype(nodes_output.dtype).itemsize
    alpha_itemsize = jnp.dtype(alpha.dtype).itemsize

    capacity = _vmem_capacity_bytes()
    # ~60% of physical per-core VMEM: ~38 MiB on v7x (64 MiB/TC),
    # ~76 MiB on v5e/v6e (128 MiB) -- both leave compiler headroom.
    vmem_budget = int(capacity * 0.6)
    tile_n = _pick_row_tile(n, d, itemsize, max_tile_rows, vmem_budget)

    d_pad = _round_up(d, 128)
    footprint = tile_n * 6 * d_pad * itemsize + 2 * 8 * tile_n * 4
    vmem_limit = int(min(capacity, max(32 * 1024 * 1024,
                                       footprint + (8 << 20))))

    grid = (pl.cdiv(n, tile_n),)
    alpha_row = alpha.reshape(1, n)          # lane-dense gate layout

    cost = pl.CostEstimate(
        flops=3 * n * d,
        transcendentals=n,
        bytes_accessed=3 * n * d * itemsize + n * alpha_itemsize,
    )

    return pl.pallas_call(
        _gated_update_kernel,
        out_shape=jax.ShapeDtypeStruct((n, d), nodes_output.dtype),
        grid=grid,
        in_specs=[
            pl.BlockSpec((1, tile_n), lambda i: (0, i)),   # alpha (lane-dense)
            pl.BlockSpec((tile_n, d), lambda i: (i, 0)),   # embedding table
            pl.BlockSpec((tile_n, d), lambda i: (i, 0)),   # nodes_output
        ],
        out_specs=pl.BlockSpec((tile_n, d), lambda i: (i, 0)),
        compiler_params=pltpu.CompilerParams(
            dimension_semantics=("parallel",),
            vmem_limit_bytes=vmem_limit,
        ),
        cost_estimate=cost,
    )(alpha_row, item_embedding_table, nodes_output)


def _reference(alpha, item_embedding_table, nodes_output):
    a = jax.nn.sigmoid(alpha)
    return (1.0 - a) * item_embedding_table + a * nodes_output


if __name__ == "__main__":
    # Small but multi-tile problem: the >=2-grid-step cap kicks in.
    items_total = 1024   # item vocabulary size
    embed_dim = 256      # multiple of 128 (lane tiling)

    key = jax.random.PRNGKey(0)
    k_alpha, k_emb, k_nodes = jax.random.split(key, 3)

    # Module "parameters":
    #   self.alpha            : (items_total, 1)  ~ torch.rand -> uniform [0,1)
    #   item_embedding.weight : (items_total, embed_dim)
    alpha = jax.random.uniform(k_alpha, (items_total, 1), dtype=jnp.float32)
    item_embedding_table = jax.random.normal(
        k_emb, (items_total, embed_dim), dtype=jnp.float32)

    # Forward inputs: `nodes` only carries device placement in the torch code.
    nodes = jnp.arange(items_total, dtype=jnp.int32)
    nodes_output = jax.random.normal(
        k_nodes, (items_total, embed_dim), dtype=jnp.float32)

    out = global_gated_updater(alpha, item_embedding_table, nodes_output)
    out = jax.block_until_ready(out)

    ref = _reference(alpha, item_embedding_table, nodes_output)
    assert out.shape == (items_total, embed_dim)
    assert jnp.allclose(out, ref, atol=1e-5, rtol=1e-5)

    print("KERNEL_OK")
</pallas_src>

<mosaic_0001>
module attributes {stable_mosaic.version = 11 : i64} {
  func.func @_gated_update_kernel(%arg0: i32, %arg1: memref<1x512xf32, #tpu.memory_space<vmem>>, %arg2: memref<512x256xf32, #tpu.memory_space<vmem>>, %arg3: memref<512x256xf32, #tpu.memory_space<vmem>>, %arg4: memref<512x256xf32, #tpu.memory_space<vmem>>) attributes {dimension_semantics = [#tpu.dimension_semantics<parallel>], iteration_bounds = array<i64: 2>, scalar_prefetch = 0 : i64, scratch_operands = 0 : i64, tpu.core_type = #tpu.core_type<tc>, window_params = [{transform_indices = @transform_0, window_bounds = array<i64: 1, 512>}, {transform_indices = @transform_1, window_bounds = array<i64: 512, 256>}, {transform_indices = @transform_2, window_bounds = array<i64: 512, 256>}, {transform_indices = @transform_3, window_bounds = array<i64: 512, 256>}]} {
    %c0 = arith.constant 0 : index
    %c0_0 = arith.constant 0 : index
    %0 = vector.load %arg1[%c0, %c0_0] : memref<1x512xf32, #tpu.memory_space<vmem>>, vector<1x512xf32>
    %1 = arith.negf %0 : vector<1x512xf32>
    %2 = math.exp %1 : vector<1x512xf32>
    %cst = arith.constant 1.000000e+00 : f32
    %3 = vector.broadcast %cst : f32 to vector<1x512xf32>
    %4 = arith.addf %3, %2 : vector<1x512xf32>
    %5 = arith.divf %3, %4 : vector<1x512xf32>
    %6 = tpu.transpose %5, [1, 0] : vector<1x512xf32> -> vector<512x1xf32>
    %c0_1 = arith.constant 0 : index
    %c0_2 = arith.constant 0 : index
    %7 = vector.load %arg2[%c0_1, %c0_2] : memref<512x256xf32, #tpu.memory_space<vmem>>, vector<512x256xf32>
    %c0_3 = arith.constant 0 : index
    %c0_4 = arith.constant 0 : index
    %8 = vector.load %arg3[%c0_3, %c0_4] : memref<512x256xf32, #tpu.memory_space<vmem>>, vector<512x256xf32>
    %9 = arith.subf %8, %7 : vector<512x256xf32>
    %10 = vector.broadcast %6 : vector<512x1xf32> to vector<512x256xf32>
    %11 = arith.mulf %10, %9 : vector<512x256xf32>
    %12 = arith.addf %7, %11 : vector<512x256xf32>
    %c0_5 = arith.constant 0 : index
    %c0_6 = arith.constant 0 : index
    %13 = vector.load %arg4[%c0_5, %c0_6] : memref<512x256xf32, #tpu.memory_space<vmem>>, vector<512x256xf32>
    tpu.vector_store %arg4[%c0_5, %c0_6], %12 {strides = array<i32>} : memref<512x256xf32, #tpu.memory_space<vmem>>, vector<512x256xf32>,
    return
  }
  func.func @transform_0(%arg0: i32) -> (i32, i32) {
    %c0_i32 = arith.constant 0 : i32
    %c0_i32_0 = arith.constant 0 : i32
    return %c0_i32, %arg0 : i32, i32
  }
  func.func @transform_1(%arg0: i32) -> (i32, i32) {
    %c0_i32 = arith.constant 0 : i32
    %c0_i32_0 = arith.constant 0 : i32
    return %arg0, %c0_i32 : i32, i32
  }
  func.func @transform_2(%arg0: i32) -> (i32, i32) {
    %c0_i32 = arith.constant 0 : i32
    %c0_i32_0 = arith.constant 0 : i32
    return %arg0, %c0_i32 : i32, i32
  }
  func.func @transform_3(%arg0: i32) -> (i32, i32) {
    %c0_i32 = arith.constant 0 : i32
    %c0_i32_0 = arith.constant 0 : i32
    return %arg0, %c0_i32 : i32, i32
  }
}

</mosaic_0001>

<bundles_post_ra>
// kernel: tpu_custom_call.1
= control target key start
LH: loop header
LB: loop body
LE: loop exit
PB: predicated region body
PF: predicated region fallthrough
CT: control target
= control target key end

     0   :  { %s2855_s0 = inlined_call_operand.hbm [shape: f32[1,1024], index: 0, kind: input, shape index: {}]   ;;  %s2856_s1 = inlined_call_operand.hbm [shape: f32[1024,256], index: 1, kind: input, shape index: {}]   ;;  %s2857_s2 = inlined_call_operand.hbm [shape: f32[1024,256], index: 2, kind: input, shape index: {}]   ;;  %s2858_s3 = inlined_call_operand.hbm [shape: f32[1024,256], index: 3, kind: output, shape index: {}]  }
   0x1   :  { %2865 = sst [smem:[#allocation13_spill]] %s2856_s1 }
   0x2   :  { %8 = vsyncpa [#allocation3], 0 }
   0x3   :  { %10 = vsyncpa [#allocation3 + $0x1], 0 }
   0x4   :  { %11 = vsyncpa [#allocation6], 0 }
   0x5   :  { %13 = vsyncpa [#allocation6 + $0x1], 0 }
   0x6   :  { %14 = vsyncpa [#allocation4], 0 }
   0x7   :  { %16 = vsyncpa [#allocation4 + $0x1], 0  ;;  %s1937_s12 = smov 0   ;;  %s1939_s13 = smov 0  }
   0x8   :  { %s1941_s14 = smov 0   ;;  %s1943_s15 = smov 0  }
   0x9 LB: > { %s1958_s16 = sadd.s32 4294967295, %s1906_s15   ;;  %s1645_s17 = sadd.s32 4294967294, %s1906_s15   ;;  %s1906_s15 = sphi %s1943_s15, %s2886_s15   ;;  %s1902_s14 = sphi %s1941_s14, %s2885_s14   ;;  %s1898_s13 = sphi %s1939_s13, %s2884_s13   ;;  %s1894_s12 = sphi %s1937_s12, %s2883_s12  }
   0xa   : > { %s1962_s18 = sadd.s32 1, %s1906_s15   ;;  %s29_s19 = sadd.s32 1, %s1902_s14 }
   0xb   : > { %s26_s20 = ssub.s32 %s1906_s15, %s1962_s18  ;;  %p36_p0 = scmp.ne.s32.totalorder %s1902_s14, %s1898_s13 }
   0xc   : > { %p27_p1 = scmp.eq.s32.totalorder %s26_s20, 0  ;;  %p37_p2 = scmp.eq.s32.totalorder %s1906_s15, 0 }
   0xd   : > { %p42_p3 = scmp.ne.s32.totalorder %s1898_s13, %s1894_s12  ;;  %p43_p4 = scmp.eq.s32.totalorder %s1958_s16, 0 }
   0xe   : > { %s1974_s21 = scalar_select %p27_p1, %s1902_s14, %s29_s19  }
   0xf   : > { %p38_p5 = por %p37_p2, %p36_p0  ;;  %p1976_p6 = por %p43_p4, %p42_p3 }
  0x10   : > { %2866 = sst [smem:[#allocation12_spill]] %s1974_s21  ;;  %p118_p7 = scmp.eq.s32.totalorder %s1958_s16, 1 }
  0x11   : > { %s2867_s22 = scalar_select %p1976_p6, 1, 0 }
  0x12   : > { %p124_p8 = scmp.eq.s32.totalorder %s1645_s17, 1  ;;  %p1700_p10 = scmp.lt.s32.totalorder %s1906_s15, 2 }
  0x13   : > { %p1983_p11 = por %p118_p7, %p36_p0  ;;  %s1992_s25 = sand.u32 1, %s1902_s14  }
  0x14   : > { %p1987_p12 = por %p124_p8, %p42_p3  ;;  %p1994_p13 = pnand %p1700_p10, %p38_p5 }
  0x15   : > { %s2868_s23 = scalar_select %p1983_p11, 1, 0 }
  0x16   : > { %s2869_s24 = scalar_select %p1987_p12, 1, 0 }
  0x17   : > { %s2870_s26 = scalar_select %p1994_p13, 1, 0 }
  0x18   : > { %s163_s27 = sand.u32 1, %s1906_s15   ;;  %s1651_s28 = sshll.u32 %s1992_s25, 10 }
  0x19   : > { %s1673_s29 = sshll.u32 %s1906_s15, 14  ;;  %s2871_s1 = sld [smem:[#allocation13_spill]] }
  0x1a   : > { %s167_s6 = scalar_lea.vmem [#allocation5], %s1651_s28  ;;  %s2012_s8 = scalar_lea.sflag [#allocation6], %s163_s27 }
  0x1b   : > { %s175_s7 = sshll.u32 %s167_s6, 4  ;;  %p2018_p1 = pneg %p1994_p13  ;;  %s2010_s7 = int_to_ptr.vmem [resolvable:$true] %s175_s7 }
  0x1f   : > { %s2006_s5 = scalar_lea.hbm %s2871_s1, %s1673_s29  ;;  %s1751_s19 = scalar_lea.hbm %s2871_s1, 32768 }
  0x20   : > { %s1746_s9 = scalar_lea.hbm %s2006_s5, 16384  ;;  %p1752_p4 = scmp.lt.u32.totalorder %s2006_s5, %s2871_s1 }
  0x21   : > { %p1747_p0 = scmp.ne.s32.totalorder %s2006_s5, %s1746_s9  ;;  %p1753_p5 = scmp.lt.u32.totalorder %s1751_s19, %s1746_s9 }
  0x22   : > { %p1755_p8 = scmp.lt.u32.totalorder %s1746_s9, %s2006_s5 }
  0x23   : > { %p1749_p2 = pnand %p2018_p1, %p1747_p0  ;;  %p1754_p7 = por %p1753_p5, %p1752_p4 }
  0x25   : > { %p1750_p3 = pneg %p1749_p2  ;;  %p1756_p10 = por %p1755_p8, %p1754_p7 }
  0x27   : > { %p1757_p9 = pnand %p1756_p10, %p1750_p3 }
  0x29   : > { %1760 = shalt.err (!%p1757_p9)
}
  0x2a   : > { %s1761_s27 = scalar_lea.vmem %s2010_s7, 16384  ;;  %s1908_s4 = smov [#allocation5]  }
  0x2b   : > { %p1762_p0 = scmp.ne.s32.totalorder %s2010_s7, %s1761_s27  ;;  %s1766_s6 = sshll.u32 %s1908_s4, 4  ;;  %s1767_s6 = int_to_ptr.vmem [resolvable:$false] %s1766_s6 }
  0x2c   : > { %s1768_s11 = scalar_lea.vmem %s1767_s6, 32768  ;;  %p1769_p11 = scmp.lt.s32.totalorder %s2010_s7, %s1767_s6 }
  0x2d   : > { %p1764_p2 = pnand %p1762_p0, %p2018_p1  ;;  %p1770_p6 = scmp.lt.s32.totalorder %s1768_s11, %s1761_s27 }
  0x2f   : > { %p1765_p12 = pneg %p1764_p2  ;;  %p1771_p4 = por %p1770_p6, %p1769_p11 }
  0x31   : > { %p1772_p5 = pnand %p1771_p4, %p1765_p12 }
  0x33   : > { %1775 = shalt.err (!%p1772_p5)
}
  0x34   : > { %s2861_s9 = smov 256   ;;  %s2862_s17 = smov 16  }
  0x35   : > { %1692 = dma.hbm_to_vmem [thread:$0]  (!%p1994_p13), %s2006_s5, 16384, %s2010_s7, %s2012_s8, %s2861_s9, %s2861_s9, %s2862_s17  }
  0x36   : > { %s2050_s30 = scalar_lea.hbm %s2857_s2, %s1673_s29  ;;  %s189_s27 = scalar_lea.vmem [#allocation7], %s1651_s28 }
  0x37   : > { %s197_s4 = sshll.u32 %s189_s27, 4  ;;  %p1659_p6 = scmp.ge.s32.totalorder %s1906_s15, 1  ;;  %s2054_s4 = int_to_ptr.vmem [resolvable:$true] %s197_s4 }
  0x38   : > { %p205_p9 = scmp.lt.s32.totalorder %s1906_s15, 3  ;;  %s1648_s6 = sshll.u32 %s1992_s25, 2 }
  0x39   : > { %s1671_s11 = sshll.u32 %s1906_s15, 6  ;;  %s148_s28 = scalar_lea.vmem [#allocation2], %s1648_s6 }
  0x3a   : > { %p2060_p11 = pnand %p1659_p6, %p205_p9  ;;  %s2067_s19 = scalar_lea.hbm %s2855_s0, %s1671_s11 }
  0x3b   : > { %s156_s29 = sshll.u32 %s148_s28, 4  ;;  %s145_s20 = scalar_lea.sflag [#allocation3], %s1992_s25  ;;  %s157_s29 = int_to_ptr.vmem [resolvable:$true] %s156_s29 }
  0x3c   : > { %s2873_s1 = scalar_select %p2060_p11, 1, 0 }
  0x3d   : > { %s1776_s27 = scalar_lea.hbm %s2067_s19, 64  ;;  %s1781_s21 = scalar_lea.hbm %s2855_s0, 128 }
  0x3e   : > { %p1777_p12 = scmp.ne.s32.totalorder %s2067_s19, %s1776_s27  ;;  %p1782_p8 = scmp.lt.u32.totalorder %s2067_s19, %s2855_s0 }
  0x3f   : > { %p1783_p10 = scmp.lt.u32.totalorder %s1781_s21, %s1776_s27  ;;  %p1785_p2 = scmp.lt.u32.totalorder %s1776_s27, %s2067_s19 }
  0x40   : > { %p1779_p3 = pnand %p1777_p12, %p2018_p1 }
  0x41   : > { %p1784_p0 = por %p1783_p10, %p1782_p8 }
  0x42   : > { %p1780_p7 = pneg %p1779_p3 }
  0x43   : > { %p1786_p4 = por %p1785_p2, %p1784_p0 }
  0x45   : > { %p1787_p5 = pnand %p1786_p4, %p1780_p7 }
  0x47   : > { %1790 = shalt.err (!%p1787_p5)
}
  0x48   : > { %s1791_s25 = scalar_lea.vmem %s157_s29, 64  ;;  %s1911_s6 = smov [#allocation2]  }
  0x49   : > { %p1792_p6 = scmp.ne.s32.totalorder %s157_s29, %s1791_s25  ;;  %s1796_s7 = sshll.u32 %s1911_s6, 4  ;;  %s1797_s7 = int_to_ptr.vmem [resolvable:$false] %s1796_s7 }
  0x4a   : > { %s1798_s9 = scalar_lea.vmem %s1797_s7, 128  ;;  %p1799_p3 = scmp.lt.s32.totalorder %s157_s29, %s1797_s7 }
  0x4b   : > { %p1794_p9 = pnand %p1792_p6, %p2018_p1  ;;  %p1800_p11 = scmp.lt.s32.totalorder %s1798_s9, %s1791_s25 }
  0x4d   : > { %p1795_p12 = pneg %p1794_p9  ;;  %p1801_p13 = por %p1800_p11, %p1799_p3 }
  0x4f   : > { %p1802_p8 = pnand %p1801_p13, %p1795_p12 }
  0x51   : > { %1805 = shalt.err (!%p1802_p8)
}
  0x52   : > { %p2874_p10 = scmp.ne.s32.totalorder %s2870_s26, 0  ;;  %s1806_s21 = scalar_lea.hbm %s2050_s30, 16384 }
  0x53   : > { %p1807_p7 = scmp.ne.s32.totalorder %s2050_s30, %s1806_s21  ;;  %s1811_s27 = scalar_lea.hbm %s2857_s2, 32768 }
  0x54   : > { %1689 = dma.hbm_to_vmem [thread:$0]  (!%p2874_p10), %s2067_s19, 64, %s157_s29, %s145_s20  }
  0x55   : > { %p1809_p0 = pnand %p1807_p7, %p2018_p1  ;;  %p1812_p13 = scmp.lt.u32.totalorder %s2050_s30, %s2857_s2 }
  0x56   : > { %p1813_p11 = scmp.lt.u32.totalorder %s1811_s27, %s1806_s21  ;;  %p1815_p5 = scmp.lt.u32.totalorder %s1806_s21, %s2050_s30 }
  0x57   : > { %p1810_p2 = pneg %p1809_p0 }
  0x58   : > { %p1814_p4 = por %p1813_p11, %p1812_p13 }
  0x5a   : > { %p1816_p6 = por %p1815_p5, %p1814_p4 }
  0x5c   : > { %p1817_p9 = pnand %p1816_p6, %p1810_p2 }
  0x5e   : > { %1820 = shalt.err (!%p1817_p9)
}
  0x5f   : > { %s1821_s19 = scalar_lea.vmem %s2054_s4, 16384  ;;  %s1912_s29 = smov [#allocation7]  }
  0x60   : > { %p1822_p12 = scmp.ne.s32.totalorder %s2054_s4, %s1821_s19  ;;  %s1826_s20 = sshll.u32 %s1912_s29, 4  ;;  %s1827_s20 = int_to_ptr.vmem [resolvable:$false] %s1826_s20 }
  0x61   : > { %s1828_s25 = scalar_lea.vmem %s1827_s20, 32768  ;;  %p1829_p7 = scmp.lt.s32.totalorder %s2054_s4, %s1827_s20 }
  0x62   : > { %p1824_p3 = pnand %p1822_p12, %p2018_p1  ;;  %p1830_p0 = scmp.lt.s32.totalorder %s1828_s25, %s1821_s19 }
  0x64   : > { %p1825_p8 = pneg %p1824_p3  ;;  %p1831_p13 = por %p1830_p0, %p1829_p7 }
  0x66   : > { %p1832_p11 = pnand %p1831_p13, %p1825_p8 }
  0x68   : > { %1835 = shalt.err (!%p1832_p11)
}
  0x69   : > { %s2875_s6 = smov 16   ;;  %s2876_s7 = smov 256  }
  0x6a   : > { %1695 = dma.hbm_to_vmem [thread:$0]  (!%p2874_p10), %s2050_s30, 16384, %s2054_s4, %s2012_s8, %s2876_s7, %s2876_s7, %s2875_s6  }
  0x6b   : > { %p2877_p1 = scmp.ne.s32.totalorder %s2873_s1, 0 }
  0x6c   : > { %s2115_s10 = sand.u32 (!%p2877_p1), 1, %s1898_s13   ;;  %p2878_p2 = scmp.ne.s32.totalorder (!%p2877_p1), %s2867_s22, 0 }
  0x6d   : > { %209 = sbr.rel (%p2877_p1) target bundleno = 613 (0x265), region = 32  ;;  %s1660_s9 = sshll.u32 (!%p2877_p1), %s2115_s10, 2 }
  0x6e   : > { %s212_s21 = scalar_lea.sflag (!%p2877_p1), [#allocation3], %s2115_s10  ;;  %s215_s17 = scalar_lea.vmem (!%p2877_p1), [#allocation2], %s1660_s9 }
  0x74   : > { %1881 = dma.done.wait (%p2878_p2), %s212_s21, 64  }
  0x75   : > { %1883 = vsyncadd (%p2878_p2), %s212_s21, 4294967232  ;;  %s220_s26 = sand.u32 1, %s1958_s16   ;;  %s2125_s1 = sshll.u32 %s2115_s10, 10 }
  0x76   : > { %s221_s8 = scalar_lea.sflag [#allocation6], %s220_s26  ;;  %s2128_s30 = scalar_lea.vmem [#allocation5], %s2125_s1 }
  0x77   : > { %1885 = dma.done.wait (%p2878_p2), %s221_s8, 32768  }
  0x78   : > { %1887 = vsyncadd (%p2878_p2), %s221_s8, 4294934528  ;;  %v270_v0 = vld [vmem:[%s215_s17] sm:$0xf]  ;;  %v278_v4 = vlaneseq  ;;  %v1913_v15 = vmov 0   ;;  %s2210_s22 = scalar_lea.vmem [#allocation7], %s2125_s1  ;;  %s2231_s4 = scalar_lea.vmem [#allocation8], %s2125_s1 }
  0x79   : > { %v1664_v1 = vmul.f32 -1.442695, %v270_v0  ;;  %s1677_s28 = sshll.u32 %s1958_s16, 14  ;;  %s1529_s27 = sshll.u32 %s2231_s4, 4  ;;  %s2809_s27 = int_to_ptr.vmem [resolvable:$true] %s1529_s27 }
  0x7a   : > { %v279_v5 = vshrl.u32 %v278_v4, 7  ;;  %s2807_s19 = scalar_lea.hbm %s2858_s3, %s1677_s28  ;;  %s1515_s16 = scalar_lea.sflag [#allocation4], %s2115_s10 }
  0x7b   : > { %1742 = vpow2.f32 %v1664_v1  ;;  %s1836_s29 = scalar_lea.vmem %s2809_s27, 16384  ;;  %p2879_p4 = scmp.ne.s32.totalorder %s2868_s23, 0 }
  0x7c   : > { %v288_v6 = vsub.s32 2, %v279_v5  ;;  %v280_v7 = vsub.s32 0, %v279_v5  ;;  %v292_v11 = vsub.s32 3, %v279_v5  ;;  %v284_v12 = vsub.s32 1, %v279_v5  ;;  %p1837_p10 = scmp.ne.s32.totalorder %s2809_s27, %s1836_s29  ;;  %s1914_s20 = smov [#allocation8]  }
  0x7d   : > { %s1840_s25 = sshll.u32 %s1914_s20, 4  ;;  %s1841_s25 = int_to_ptr.vmem [resolvable:$false] %s1840_s25 }
  0x7e   : > { %p1838_p5 = pnand %p1837_p10, %p2879_p4  ;;  %s1842_s6 = scalar_lea.vmem %s1841_s25, 32768 }
  0x7f   : > { %p1843_p9 = scmp.lt.s32.totalorder %s2809_s27, %s1841_s25  ;;  %p1844_p12 = scmp.lt.s32.totalorder %s1842_s6, %s1836_s29 }
  0x80   : > { %p1839_p6 = pneg %p1838_p5 }
  0x81   : > { %p1845_p3 = por %p1844_p12, %p1843_p9 }
  0x83   : > { %p1846_p8 = pnand %p1845_p3, %p1839_p6 }
  0x85   : > { %v1743_v2 = vpop.eup %1742 }
  0x86   : > { %v274_v3 = vadd.f32 1.0, %v1743_v2 }
  0x88   : > { %1744 = vrcp.f32 %v274_v3 }
  0x92   : > { %v1745_v8 = vpop.eup %1744 }
  0x93   : > { %v289_v9 = vrot.slane %v1745_v8, %v288_v6  ;;  %v281_v10 = vrot.slane %v1745_v8, %v280_v7  ;;  %v293_v13 = vrot.slane %v1745_v8, %v292_v11  ;;  %v285_v14 = vrot.slane %v1745_v8, %v284_v12 }
  0x95   : > { %362 = vxpose.xlu1.b32.start.end [1/1] (short) %v289_v9, 128  ;;  %298 = vxpose.xlu0.b32.start.end [1/1] (short) %v281_v10, 128 }
  0xd2   : > { %394 = vxpose.xlu1.b32.start.end [1/1] (short) %v293_v13, 128  ;;  %330 = vxpose.xlu0.b32.start.end [1/1] (short) %v285_v14, 128 }
  0xf0   : > { %1741 = vset.pattern.permute.xlu1 %v1913_v15 }
  0xfb   : > { %1740 = vset.pattern.permute.xlu0 %v1913_v15  ;;  %v428_v15 = vld [vmem:[%s2128_s30 + $0x10] sm:$0xff] }
 0x115   : > { %v314_v16 = vpop.trf.xlu0  ;;  %v2134_v17 = vpop.trf.xlu1 }
 0x119   : > { %v315_v18 = vpop.trf.xlu0  ;;  %v2136_v19 = vpop.trf.xlu1 }
 0x11d   : > { %v316_v20 = vpop.trf.xlu0  ;;  %v2138_v21 = vpop.trf.xlu1 }
 0x121   : > { %v317_v22 = vpop.trf.xlu0  ;;  %v2140_v23 = vpop.trf.xlu1 }
 0x125   : > { %v318_v24 = vpop.trf.xlu0  ;;  %v2142_v25 = vpop.trf.xlu1 }
 0x129   : > { %v319_v26 = vpop.trf.xlu0  ;;  %v2144_v27 = vpop.trf.xlu1 }
 0x12c   : > { %817 = vperm.xlu1 %1741, %v315_v18   ;;  %v556_v18 = vld [vmem:[%s2210_s22 + $0x10] sm:$0xff] }
 0x12d   : > { %v320_v28 = vpop.trf.xlu0  ;;  %v2146_v29 = vpop.trf.xlu1 }
 0x130   : > { %822 = vperm.xlu1 %1741, %v316_v20   ;;  %v684_v20 = vsub.f32 %v556_v18, %v428_v15 }
 0x131   : > { %v321_v30 = vpop.trf.xlu0  ;;  %v2148_v31 = vpop.trf.xlu1 }
 0x134   : > { %827 = vperm.xlu1 %1741, %v317_v22   ;;  %v430_v22 = vld [vmem:[%s2128_s30 + $0x20] sm:$0xff] }
 0x135   : > { %v322_v32 = vpop.trf.xlu0  ;;  %v2150_v33 = vpop.trf.xlu1 }
 0x137   : > { %812 = vperm.xlu0 %1740, %v314_v16  }
 0x138   : > { %832 = vperm.xlu1 %1741, %v318_v24   ;;  %v558_v24 = vld [vmem:[%s2210_s22 + $0x20] sm:$0xff] }
 0x139   : > { %v323_v34 = vpop.trf.xlu0  ;;  %v2152_v35 = vpop.trf.xlu1 }
 0x13b   : > { %837 = vperm.xlu0 %1740, %v319_v26  }
 0x13c   : > { %842 = vperm.xlu1 %1741, %v320_v28  }
 0x13d   : > { %v324_v36 = vpop.trf.xlu0  ;;  %v2154_v37 = vpop.trf.xlu1 }
 0x13f   : > { %847 = vperm.xlu0 %1740, %v321_v30  }
 0x140   : > { %852 = vperm.xlu1 %1741, %v322_v32   ;;  %v433_v32 = vld [vmem:[%s2128_s30 + $0x38] sm:$0xff] }
 0x141   : > { %v325_v38 = vpop.trf.xlu0  ;;  %v2156_v39 = vpop.trf.xlu1 }
 0x143   : > { %857 = vperm.xlu0 %1740, %v323_v34   ;;  %v561_v34 = vld [vmem:[%s2210_s22 + $0x38] sm:$0xff] }
 0x144   : > { %862 = vperm.xlu1 %1741, %v324_v36  }
 0x145   : > { %v326_v40 = vpop.trf.xlu0  ;;  %v2158_v41 = vpop.trf.xlu1 }
 0x147   : > { %867 = vperm.xlu0 %1740, %v325_v38   ;;  %v426_v38 = vld [vmem:[%s2128_s30] sm:$0xff] }
 0x148   : > { %872 = vperm.xlu1 %1741, %v326_v40  }
 0x149   : > { %v327_v42 = vpop.trf.xlu0  ;;  %v2160_v43 = vpop.trf.xlu1 }
 0x14b   : > { %877 = vperm.xlu0 %1740, %v327_v42  }
 0x14d   : > { %v328_v44 = vpop.trf.xlu0  ;;  %v2162_v45 = vpop.trf.xlu1 }
 0x14e   : > { %882 = vperm.xlu1 %1741, %v328_v44   ;;  %v689_v44 = vsub.f32 %v561_v34, %v433_v32 }
 0x151   : > { %v329_v46 = vpop.trf.xlu0  ;;  %v2164_v47 = vpop.trf.xlu1 }
 0x152   : > { %887 = vperm.xlu0 %1740, %v329_v46   ;;  %v434_v46 = vld [vmem:[%s2128_s30 + $0x40] sm:$0xff] }
 0x155   : > { %v346_v48 = vpop.trf.xlu0  ;;  %v2166_v49 = vpop.trf.xlu1 }
 0x156   : > { %892 = vperm.xlu1 %1741, %v346_v48   ;;  %v435_v48 = vld [vmem:[%s2128_s30 + $0x48] sm:$0xff] }
 0x159   : > { %v347_v50 = vpop.trf.xlu0  ;;  %v2168_v51 = vpop.trf.xlu1 }
 0x15a   : > { %897 = vperm.xlu0 %1740, %v347_v50   ;;  %v562_v50 = vld [vmem:[%s2210_s22 + $0x40] sm:$0xff] }
 0x15d   : > { %v348_v52 = vpop.trf.xlu0  ;;  %v2170_v53 = vpop.trf.xlu1 }
 0x15e   : > { %902 = vperm.xlu1 %1741, %v348_v52   ;;  %v563_v52 = vld [vmem:[%s2210_s22 + $0x48] sm:$0xff] }
 0x161   : > { %v349_v54 = vpop.trf.xlu0  ;;  %v2172_v55 = vpop.trf.xlu1 }
 0x162   : > { %907 = vperm.xlu0 %1740, %v349_v54  }
 0x165   : > { %v350_v56 = vpop.trf.xlu0  ;;  %v2174_v57 = vpop.trf.xlu1 }
 0x166   : > { %912 = vperm.xlu1 %1741, %v350_v56  }
 0x169   : > { %v351_v58 = vpop.trf.xlu0  ;;  %v2176_v59 = vpop.trf.xlu1 }
 0x16a   : > { %917 = vperm.xlu0 %1740, %v351_v58  }
 0x16d   : > { %v352_v60 = vpop.trf.xlu0  ;;  %v2178_v61 = vpop.trf.xlu1 }
 0x16e   : > { %922 = vperm.xlu1 %1741, %v352_v60  }
 0x171   : > { %v353_v62 = vpop.trf.xlu0  ;;  %v2180_v0 = vpop.trf.xlu1 }
 0x172   : > { %927 = vperm.xlu0 %1740, %v353_v62  }
 0x175   : > { %v354_v63 = vpop.trf.xlu0  ;;  %v2182_v2 = vpop.trf.xlu1 }
 0x176   : > { %932 = vperm.xlu1 %1741, %v354_v63   ;;  %v2244_v63 = vld [vmem:[%s2128_s30 + $0x50] sm:$0xff] }
 0x179   : > { %v355_v1 = vpop.trf.xlu0  ;;  %v2184_v5 = vpop.trf.xlu1 }
 0x17a   : > { %937 = vperm.xlu0 %1740, %v355_v1   ;;  %v2247_v1 = vld [vmem:[%s2128_s30 + $0x58] sm:$0xff] }
 0x17d   : > { %v356_v3 = vpop.trf.xlu0  ;;  %v2186_v7 = vpop.trf.xlu1 }
 0x17e   : > { %942 = vperm.xlu1 %1741, %v356_v3  }
 0x181   : > { %v357_v4 = vpop.trf.xlu0  ;;  %v2188_v10 = vpop.trf.xlu1 }
 0x182   : > { %947 = vperm.xlu0 %1740, %v357_v4  }
 0x185   : > { %v358_v6 = vpop.trf.xlu0  ;;  %v2191_v12 = vpop.trf.xlu1 }
 0x186   : > { %952 = vperm.xlu1 %1741, %v358_v6   ;;  %v690_v6 = vsub.f32 %v562_v50, %v434_v46 }
 0x189   : > { %v359_v8 = vpop.trf.xlu0  ;;  %v2195_v13 = vpop.trf.xlu1 }
 0x18a   : > { %957 = vperm.xlu0 %1740, %v359_v8   ;;  %v691_v8 = vsub.f32 %v563_v52, %v435_v48 }
 0x18d   : > { %v360_v9 = vpop.trf.xlu0  ;;  %v2201_v14 = vpop.trf.xlu1 }
 0x18e   : > { %962 = vperm.xlu1 %1741, %v360_v9   ;;  %v564_v9 = vld [vmem:[%s2210_s22 + $0x50] sm:$0xff] }
 0x191   : > { %v361_v11 = vpop.trf.xlu0  ;;  %v2206_v16 = vpop.trf.xlu1 }
 0x192   : > { %972 = vperm.xlu1 %1741, %v2134_v17   ;;  %967 = vperm.xlu0 %1740, %v361_v11   ;;  %v429_v17 = vld [vmem:[%s2128_s30 + $0x18] sm:$0xff]  ;;  %v439_v11 = vld [vmem:[%s2128_s30 + $0x68] sm:$0xff] }
 0x196   : > { %982 = vperm.xlu1 %1741, %v2138_v21   ;;  %977 = vperm.xlu0 %1740, %v2136_v19   ;;  %v557_v19 = vld [vmem:[%s2210_s22 + $0x18] sm:$0xff] }
 0x197   : > { %v685_v21 = vsub.f32 %v557_v19, %v429_v17 }
 0x19a   : > { %992 = vperm.xlu1 %1741, %v2142_v25   ;;  %987 = vperm.xlu0 %1740, %v2140_v23   ;;  %v431_v23 = vld [vmem:[%s2128_s30 + $0x28] sm:$0xff] }
 0x19b   : > { %v559_v25 = vld [vmem:[%s2210_s22 + $0x28] sm:$0xff] }
 0x19c   : > { %v687_v30 = vsub.f32 %v559_v25, %v431_v23 }
 0x19e   : > { %1002 = vperm.xlu1 %1741, %v2146_v29   ;;  %997 = vperm.xlu0 %1740, %v2144_v27   ;;  %v686_v29 = vsub.f32 %v558_v24, %v430_v22  ;;  %v692_v24 = vsub.f32 %v564_v9, %v2244_v63 }
 0x1a2   : > { %1012 = vperm.xlu1 %1741, %v2150_v33   ;;  %1007 = vperm.xlu0 %1740, %v2148_v31   ;;  %v432_v31 = vld [vmem:[%s2128_s30 + $0x30] sm:$0xff] }
 0x1a3   : > { %v560_v33 = vld [vmem:[%s2210_s22 + $0x30] sm:$0xff] }
 0x1a4   : > { %v688_v42 = vsub.f32 %v560_v33, %v432_v31 }
 0x1a6   : > { %1022 = vperm.xlu1 %1741, %v2154_v37   ;;  %1017 = vperm.xlu0 %1740, %v2152_v35  }
 0x1aa   : > { %1032 = vperm.xlu1 %1741, %v2158_v41   ;;  %1027 = vperm.xlu0 %1740, %v2156_v39   ;;  %v427_v39 = vld [vmem:[%s2128_s30 + $0x8] sm:$0xff] }
 0x1ab   : > { %v818_v26 = vpop.permute.xlu1 %817 }
 0x1ac   : > { %v1132_v27 = vmul.f32 %v818_v26, %v684_v20  ;;  %v1133_v28 = vmul.f32 %v818_v26, %v685_v21  ;;  %v2262_v26 = vld [vmem:[%s2128_s30 + $0x70] sm:$0xff] }
 0x1ae   : > { %v1260_v35 = vadd.f32 %v1132_v27, %v428_v15  ;;  %v1261_v36 = vadd.f32 %v1133_v28, %v429_v17  ;;  %1042 = vperm.xlu1 %1741, %v2162_v45   ;;  %1037 = vperm.xlu0 %1740, %v2160_v43   ;;  %v554_v45 = vld [vmem:[%s2210_s22] sm:$0xff]  ;;  %v555_v43 = vld [vmem:[%s2210_s22 + $0x8] sm:$0xff]  ;;  %v2265_v27 = vld [vmem:[%s2128_s30 + $0x78] sm:$0xff] }
 0x1af   : > { %v823_v37 = vpop.permute.xlu1 %822  ;;  %v682_v60 = vsub.f32 %v554_v45, %v426_v38  ;;  %v683_v62 = vsub.f32 %v555_v43, %v427_v39  ;;  %v566_v15 = vld [vmem:[%s2210_s22 + $0x60] sm:$0xff]  ;;  %v567_v17 = vld [vmem:[%s2210_s22 + $0x68] sm:$0xff] }
 0x1b0   : > { %1388 = vst [vmem:[%s2231_s4 + $0x10] sm:$0xff] %v1260_v35  ;;  %1389 = vst [vmem:[%s2231_s4 + $0x18] sm:$0xff] %v1261_v36  ;;  %v1134_v40 = vmul.f32 %v823_v37, %v686_v29  ;;  %v1135_v41 = vmul.f32 %v823_v37, %v687_v30  ;;  %v695_v29 = vsub.f32 %v567_v17, %v439_v11  ;;  %v568_v30 = vld [vmem:[%s2210_s22 + $0x70] sm:$0xff]  ;;  %v443_v35 = vld [vmem:[%s2128_s30 + $0x88] sm:$0xff] }
 0x1b1   : > { %v570_v36 = vld [vmem:[%s2210_s22 + $0x80] sm:$0xff]  ;;  %v571_v37 = vld [vmem:[%s2210_s22 + $0x88] sm:$0xff]  ;;  %v696_v45 = vsub.f32 %v568_v30, %v2262_v26 }
 0x1b2   : > { %v1262_v54 = vadd.f32 %v1134_v40, %v430_v22  ;;  %v1263_v56 = vadd.f32 %v1135_v41, %v431_v23  ;;  %1052 = vperm.xlu1 %1741, %v2166_v49   ;;  %1047 = vperm.xlu0 %1740, %v2164_v47   ;;  %v565_v49 = vld [vmem:[%s2210_s22 + $0x58] sm:$0xff]  ;;  %v438_v47 = vld [vmem:[%s2128_s30 + $0x60] sm:$0xff]  ;;  %v699_v52 = vsub.f32 %v571_v37, %v443_v35  ;;  %v452_v37 = vld [vmem:[%s2128_s30 + $0xd0] sm:$0xff] }
 0x1b3   : > { %v828_v58 = vpop.permute.xlu1 %827  ;;  %v693_v25 = vsub.f32 %v565_v49, %v2247_v1  ;;  %v694_v28 = vsub.f32 %v566_v15, %v438_v47 }
 0x1b4   : > { %1390 = vst [vmem:[%s2231_s4 + $0x20] sm:$0xff] %v1262_v54  ;;  %1391 = vst [vmem:[%s2231_s4 + $0x28] sm:$0xff] %v1263_v56  ;;  %v1136_v3 = vmul.f32 %v828_v58, %v688_v42  ;;  %v1137_v4 = vmul.f32 %v828_v58, %v689_v44  ;;  %v572_v54 = vld [vmem:[%s2210_s22 + $0x90] sm:$0xff]  ;;  %v573_v56 = vld [vmem:[%s2210_s22 + $0x98] sm:$0xff] }
 0x1b5   : > { %v446_v58 = vld [vmem:[%s2128_s30 + $0xa0] sm:$0xff] }
 0x1b6   : > { %v1264_v18 = vadd.f32 %v1136_v3, %v432_v31  ;;  %v1265_v19 = vadd.f32 %v1137_v4, %v433_v32  ;;  %1062 = vperm.xlu1 %1741, %v2170_v53   ;;  %1057 = vperm.xlu0 %1740, %v2168_v51   ;;  %v813_v20 = vpop.permute.xlu0 %812  ;;  %v569_v31 = vld [vmem:[%s2210_s22 + $0x78] sm:$0xff]  ;;  %v442_v32 = vld [vmem:[%s2128_s30 + $0x80] sm:$0xff]  ;;  %v447_v3 = vld [vmem:[%s2128_s30 + $0xa8] sm:$0xff] }
 0x1b7   : > { %v1130_v21 = vmul.f32 %v813_v20, %v682_v60  ;;  %v1131_v22 = vmul.f32 %v813_v20, %v683_v62  ;;  %v833_v23 = vpop.permute.xlu1 %832  ;;  %v697_v43 = vsub.f32 %v569_v31, %v2265_v27  ;;  %v698_v50 = vsub.f32 %v570_v36, %v442_v32  ;;  %v574_v4 = vld [vmem:[%s2210_s22 + $0xa0] sm:$0xff] }
 0x1b8   : > { %1392 = vst [vmem:[%s2231_s4 + $0x30] sm:$0xff] %v1264_v18  ;;  %1393 = vst [vmem:[%s2231_s4 + $0x38] sm:$0xff] %v1265_v19  ;;  %v1138_v51 = vmul.f32 %v833_v23, %v690_v6  ;;  %v1139_v53 = vmul.f32 %v833_v23, %v691_v8  ;;  %v575_v6 = vld [vmem:[%s2210_s22 + $0xa8] sm:$0xff]  ;;  %v702_v19 = vsub.f32 %v574_v4, %v446_v58  ;;  %v450_v23 = vld [vmem:[%s2128_s30 + $0xc0] sm:$0xff] }
 0x1b9   : > { %v1258_v33 = vadd.f32 %v1130_v21, %v426_v38  ;;  %v1259_v34 = vadd.f32 %v1131_v22, %v427_v39  ;;  %v703_v20 = vsub.f32 %v575_v6, %v447_v3  ;;  %v576_v21 = vld [vmem:[%s2210_s22 + $0xb0] sm:$0xff]  ;;  %v577_v22 = vld [vmem:[%s2210_s22 + $0xb8] sm:$0xff] }
 0x1ba   : > { %v1266_v40 = vadd.f32 %v1138_v51, %v434_v46  ;;  %v1267_v41 = vadd.f32 %v1139_v53, %v435_v48  ;;  %1072 = vperm.xlu1 %1741, %v2174_v57   ;;  %1067 = vperm.xlu0 %1740, %v2172_v55   ;;  %v838_v42 = vpop.permute.xlu0 %837  ;;  %v2282_v46 = vld [vmem:[%s2128_s30 + $0x90] sm:$0xff]  ;;  %v2285_v57 = vld [vmem:[%s2128_s30 + $0x98] sm:$0xff]  ;;  %v451_v51 = vld [vmem:[%s2128_s30 + $0xc8] sm:$0xff] }
 0x1bb   : > { %1386 = vst [vmem:[%s2231_s4] sm:$0xff] %v1258_v33  ;;  %1387 = vst [vmem:[%s2231_s4 + $0x8] sm:$0xff] %v1259_v34  ;;  %v1140_v38 = vmul.f32 %v838_v42, %v692_v24  ;;  %v1141_v39 = vmul.f32 %v838_v42, %v693_v25  ;;  %v843_v44 = vpop.permute.xlu1 %842  ;;  %v700_v17 = vsub.f32 %v572_v54, %v2282_v46  ;;  %v578_v53 = vld [vmem:[%s2210_s22 + $0xc0] sm:$0xff]  ;;  %v581_v42 = vld [vmem:[%s2210_s22 + $0xd8] sm:$0xff] }
 0x1bc   : > { %1394 = vst [vmem:[%s2231_s4 + $0x40] sm:$0xff] %v1266_v40  ;;  %1395 = vst [vmem:[%s2231_s4 + $0x48] sm:$0xff] %v1267_v41  ;;  %v1142_v55 = vmul.f32 %v843_v44, %v694_v28  ;;  %v1143_v48 = vmul.f32 %v843_v44, %v695_v29  ;;  %v579_v28 = vld [vmem:[%s2210_s22 + $0xc8] sm:$0xff]  ;;  %v453_v40 = vld [vmem:[%s2128_s30 + $0xd8] sm:$0xff] }
 0x1bd   : > { %v1268_v60 = vadd.f32 %v1140_v38, %v2244_v63  ;;  %v1269_v62 = vadd.f32 %v1141_v39, %v2247_v1  ;;  %v580_v41 = vld [vmem:[%s2210_s22 + $0xd0] sm:$0xff] }
 0x1be   : > { %v1270_v8 = vadd.f32 %v1142_v55, %v438_v47  ;;  %v1271_v9 = vadd.f32 %v1143_v48, %v439_v11  ;;  %1082 = vperm.xlu1 %1741, %v2178_v61   ;;  %1077 = vperm.xlu0 %1740, %v2176_v59   ;;  %v848_v49 = vpop.permute.xlu0 %847  ;;  %v701_v47 = vsub.f32 %v573_v56, %v2285_v57  ;;  %v448_v11 = vld [vmem:[%s2128_s30 + $0xb0] sm:$0xff]  ;;  %v449_v61 = vld [vmem:[%s2128_s30 + $0xb8] sm:$0xff]  ;;  %v454_v55 = vld [vmem:[%s2128_s30 + $0xe0] sm:$0xff] }
 0x1bf   : > { %1396 = vst [vmem:[%s2231_s4 + $0x50] sm:$0xff] %v1268_v60  ;;  %1397 = vst [vmem:[%s2231_s4 + $0x58] sm:$0xff] %v1269_v62  ;;  %v1144_v63 = vmul.f32 %v848_v49, %v696_v45  ;;  %v1145_v1 = vmul.f32 %v848_v49, %v697_v43  ;;  %v853_v15 = vpop.permute.xlu1 %852  ;;  %v704_v34 = vsub.f32 %v576_v21, %v448_v11  ;;  %v582_v48 = vld [vmem:[%s2210_s22 + $0xe0] sm:$0xff]  ;;  %v456_v49 = vld [vmem:[%s2128_s30 + $0xf0] sm:$0xff] }
 0x1c0   : > { %1398 = vst [vmem:[%s2231_s4 + $0x60] sm:$0xff] %v1270_v8  ;;  %1399 = vst [vmem:[%s2231_s4 + $0x68] sm:$0xff] %v1271_v9  ;;  %v1146_v59 = vmul.f32 %v853_v15, %v698_v50  ;;  %v1147_v18 = vmul.f32 %v853_v15, %v699_v52  ;;  %v705_v36 = vsub.f32 %v577_v22, %v449_v61  ;;  %v459_v21 = vld [vmem:[%s2128_s30 + $0x108] sm:$0xff]  ;;  %v586_v22 = vld [vmem:[%s2210_s22 + $0x100] sm:$0xff] }
 0x1c1   : > { %v1272_v24 = vadd.f32 %v1144_v63, %v2262_v26  ;;  %v1273_v25 = vadd.f32 %v1145_v1, %v2265_v27  ;;  %v708_v54 = vsub.f32 %v580_v41, %v452_v37  ;;  %v709_v56 = vsub.f32 %v581_v42, %v453_v40  ;;  %v584_v63 = vld [vmem:[%s2210_s22 + $0xf0] sm:$0xff] }
 0x1c2   : > { %v1274_v29 = vadd.f32 %v1146_v59, %v442_v32  ;;  %v1275_v30 = vadd.f32 %v1147_v18, %v443_v35  ;;  %1092 = vperm.xlu1 %1741, %v2182_v2   ;;  %1087 = vperm.xlu0 %1740, %v2180_v0   ;;  %v858_v31 = vpop.permute.xlu0 %857  ;;  %v706_v0 = vsub.f32 %v578_v53, %v450_v23 }
 0x1c3   : > { %1400 = vst [vmem:[%s2231_s4 + $0x70] sm:$0xff] %v1272_v24  ;;  %1401 = vst [vmem:[%s2231_s4 + $0x78] sm:$0xff] %v1273_v25  ;;  %v1148_v26 = vmul.f32 %v858_v31, %v700_v17  ;;  %v1149_v27 = vmul.f32 %v858_v31, %v701_v47  ;;  %v863_v33 = vpop.permute.xlu1 %862  ;;  %v707_v35 = vsub.f32 %v579_v28, %v451_v51  ;;  %v457_v17 = vld [vmem:[%s2128_s30 + $0xf8] sm:$0xff]  ;;  %v588_v31 = vld [vmem:[%s2210_s22 + $0x110] sm:$0xff] }
 0x1c4   : > { %1402 = vst [vmem:[%s2231_s4 + $0x80] sm:$0xff] %v1274_v29  ;;  %1403 = vst [vmem:[%s2231_s4 + $0x88] sm:$0xff] %v1275_v30  ;;  %v1150_v32 = vmul.f32 %v863_v33, %v702_v19  ;;  %v1151_v2 = vmul.f32 %v863_v33, %v703_v20  ;;  %v585_v47 = vld [vmem:[%s2210_s22 + $0xf8] sm:$0xff]  ;;  %v458_v20 = vld [vmem:[%s2128_s30 + $0x100] sm:$0xff] }
 0x1c5   : > { %v1276_v38 = vadd.f32 %v1148_v26, %v2282_v46  ;;  %v1277_v39 = vadd.f32 %v1149_v27, %v2285_v57  ;;  %v455_v57 = vld [vmem:[%s2128_s30 + $0xe8] sm:$0xff]  ;;  %v713_v19 = vsub.f32 %v585_v47, %v457_v17  ;;  %v714_v53 = vsub.f32 %v586_v22, %v458_v20  ;;  %v460_v29 = vld [vmem:[%s2128_s30 + $0x110] sm:$0xff]  ;;  %v461_v30 = vld [vmem:[%s2128_s30 + $0x118] sm:$0xff] }
 0x1c6   : > { %v1278_v44 = vadd.f32 %v1150_v32, %v446_v58  ;;  %v1279_v45 = vadd.f32 %v1151_v2, %v447_v3  ;;  %1102 = vperm.xlu1 %1741, %v2186_v7   ;;  %1097 = vperm.xlu0 %1740, %v2184_v5   ;;  %v868_v43 = vpop.permute.xlu0 %867  ;;  %v583_v58 = vld [vmem:[%s2210_s22 + $0xe8] sm:$0xff]  ;;  %v710_v3 = vsub.f32 %v582_v48, %v454_v55  ;;  %v589_v26 = vld [vmem:[%s2210_s22 + $0x118] sm:$0xff]  ;;  %v462_v2 = vld [vmem:[%s2128_s30 + $0x120] sm:$0xff] }
 0x1c7   : > { %1404 = vst [vmem:[%s2231_s4 + $0x90] sm:$0xff] %v1276_v38  ;;  %1405 = vst [vmem:[%s2231_s4 + $0x98] sm:$0xff] %v1277_v39  ;;  %v1152_v50 = vmul.f32 %v868_v43, %v704_v34  ;;  %v1153_v52 = vmul.f32 %v868_v43, %v705_v36  ;;  %v873_v46 = vpop.permute.xlu1 %872  ;;  %v711_v9 = vsub.f32 %v583_v58, %v455_v57  ;;  %v465_v48 = vld [vmem:[%s2128_s30 + $0x138] sm:$0xff]  ;;  %v470_v22 = vld [vmem:[%s2128_s30 + $0x160] sm:$0xff] }
 0x1c8   : > { %1406 = vst [vmem:[%s2231_s4 + $0xa0] sm:$0xff] %v1278_v44  ;;  %1407 = vst [vmem:[%s2231_s4 + $0xa8] sm:$0xff] %v1279_v45  ;;  %v1154_v7 = vmul.f32 %v873_v46, %v706_v0  ;;  %v1155_v5 = vmul.f32 %v873_v46, %v707_v35  ;;  %v717_v32 = vsub.f32 %v589_v26, %v461_v30  ;;  %v463_v0 = vld [vmem:[%s2128_s30 + $0x128] sm:$0xff]  ;;  %v590_v35 = vld [vmem:[%s2210_s22 + $0x120] sm:$0xff] }
 0x1c9   : > { %v1280_v60 = vadd.f32 %v1152_v50, %v448_v11  ;;  %v1281_v62 = vadd.f32 %v1153_v52, %v449_v61  ;;  %v712_v61 = vsub.f32 %v584_v63, %v456_v49  ;;  %v718_v45 = vsub.f32 %v590_v35, %v462_v2  ;;  %v592_v50 = vld [vmem:[%s2210_s22 + $0x130] sm:$0xff]  ;;  %v593_v52 = vld [vmem:[%s2210_s22 + $0x138] sm:$0xff]  ;;  %v474_v35 = vld [vmem:[%s2128_s30 + $0x180] sm:$0xff] }
 0x1ca   : > { %v1282_v4 = vadd.f32 %v1154_v7, %v450_v23  ;;  %v1283_v6 = vadd.f32 %v1155_v5, %v451_v51  ;;  %1112 = vperm.xlu1 %1741, %v2191_v12   ;;  %1107 = vperm.xlu0 %1740, %v2188_v10   ;;  %v878_v8 = vpop.permute.xlu0 %877  ;;  %v587_v23 = vld [vmem:[%s2210_s22 + $0x108] sm:$0xff]  ;;  %v721_v5 = vsub.f32 %v593_v52, %v465_v48  ;;  %v469_v47 = vld [vmem:[%s2128_s30 + $0x158] sm:$0xff] }
 0x1cb   : > { %1408 = vst [vmem:[%s2231_s4 + $0xb0] sm:$0xff] %v1280_v60  ;;  %1409 = vst [vmem:[%s2231_s4 + $0xb8] sm:$0xff] %v1281_v62  ;;  %v1156_v1 = vmul.f32 %v878_v8, %v708_v54  ;;  %v1157_v15 = vmul.f32 %v878_v8, %v709_v56  ;;  %v715_v28 = vsub.f32 %v587_v23, %v459_v21  ;;  %v466_v60 = vld [vmem:[%s2128_s30 + $0x140] sm:$0xff]  ;;  %v467_v62 = vld [vmem:[%s2128_s30 + $0x148] sm:$0xff] }
 0x1cc   : > { %1410 = vst [vmem:[%s2231_s4 + $0xc0] sm:$0xff] %v1282_v4  ;;  %1411 = vst [vmem:[%s2231_s4 + $0xc8] sm:$0xff] %v1283_v6  ;;  %v595_v4 = vld [vmem:[%s2210_s22 + $0x148] sm:$0xff]  ;;  %v473_v26 = vld [vmem:[%s2128_s30 + $0x178] sm:$0xff] }
 0x1cd   : > { %v1284_v12 = vadd.f32 %v1156_v1, %v452_v37  ;;  %v1285_v10 = vadd.f32 %v1157_v15, %v453_v40  ;;  %v883_v11 = vpop.permute.xlu1 %882  ;;  %v591_v40 = vld [vmem:[%s2210_s22 + $0x128] sm:$0xff]  ;;  %v723_v15 = vsub.f32 %v595_v4, %v467_v62  ;;  %v477_v52 = vld [vmem:[%s2128_s30 + $0x198] sm:$0xff] }
 0x1ce   : > { %v1158_v59 = vmul.f32 %v883_v11, %v710_v3  ;;  %v1159_v18 = vmul.f32 %v883_v11, %v711_v9  ;;  %1122 = vperm.xlu1 %1741, %v2201_v14   ;;  %1117 = vperm.xlu0 %1740, %v2195_v13   ;;  %v719_v43 = vsub.f32 %v591_v40, %v463_v0  ;;  %v594_v3 = vld [vmem:[%s2210_s22 + $0x140] sm:$0xff]  ;;  %v471_v23 = vld [vmem:[%s2128_s30 + $0x168] sm:$0xff] }
 0x1cf   : > { %1412 = vst [vmem:[%s2231_s4 + $0xd0] sm:$0xff] %v1284_v12  ;;  %1413 = vst [vmem:[%s2231_s4 + $0xd8] sm:$0xff] %v1285_v10  ;;  %v722_v1 = vsub.f32 %v594_v3, %v466_v60  ;;  %v596_v12 = vld [vmem:[%s2210_s22 + $0x150] sm:$0xff]  ;;  %v597_v10 = vld [vmem:[%s2210_s22 + $0x158] sm:$0xff] }
 0x1d0   : > { %v1286_v24 = vadd.f32 %v1158_v59, %v454_v55  ;;  %v1287_v25 = vadd.f32 %v1159_v18, %v455_v57  ;;  %v464_v55 = vld [vmem:[%s2128_s30 + $0x130] sm:$0xff]  ;;  %v475_v40 = vld [vmem:[%s2128_s30 + $0x188] sm:$0xff]  ;;  %v478_v3 = vld [vmem:[%s2128_s30 + $0x1a0] sm:$0xff] }
 0x1d1   : > { %v888_v51 = vpop.permute.xlu0 %887  ;;  %v720_v7 = vsub.f32 %v592_v50, %v464_v55  ;;  %v476_v50 = vld [vmem:[%s2128_s30 + $0x190] sm:$0xff]  ;;  %v479_v4 = vld [vmem:[%s2128_s30 + $0x1a8] sm:$0xff] }
 0x1d2   : > { %1414 = vst [vmem:[%s2231_s4 + $0xe0] sm:$0xff] %v1286_v24  ;;  %1415 = vst [vmem:[%s2231_s4 + $0xe8] sm:$0xff] %v1287_v25  ;;  %v1160_v14 = vmul.f32 %v888_v51, %v712_v61  ;;  %v1161_v13 = vmul.f32 %v888_v51, %v713_v19  ;;  %1127 = vperm.xlu0 %1740, %v2206_v16   ;;  %v716_v16 = vsub.f32 %v588_v31, %v460_v29  ;;  %v598_v24 = vld [vmem:[%s2210_s22 + $0x160] sm:$0xff]  ;;  %v599_v25 = vld [vmem:[%s2210_s22 + $0x168] sm:$0xff] }
 0x1d3   : > { %v472_v31 = vld [vmem:[%s2128_s30 + $0x170] sm:$0xff] }
 0x1d4   : > { %v1288_v27 = vadd.f32 %v1160_v14, %v456_v49  ;;  %v1289_v33 = vadd.f32 %v1161_v13, %v457_v17  ;;  %v468_v17 = vld [vmem:[%s2128_s30 + $0x150] sm:$0xff] }
 0x1d5   : > { %v893_v34 = vpop.permute.xlu1 %892 }
 0x1d6   : > { %1416 = vst [vmem:[%s2231_s4 + $0xf0] sm:$0xff] %v1288_v27  ;;  %1417 = vst [vmem:[%s2231_s4 + $0xf8] sm:$0xff] %v1289_v33  ;;  %v1162_v36 = vmul.f32 %v893_v34, %v714_v53  ;;  %v1163_v37 = vmul.f32 %v893_v34, %v715_v28  ;;  %v600_v27 = vld [vmem:[%s2210_s22 + $0x170] sm:$0xff]  ;;  %v601_v33 = vld [vmem:[%s2210_s22 + $0x178] sm:$0xff] }
 0x1d8   : > { %v1290_v41 = vadd.f32 %v1162_v36, %v458_v20  ;;  %v1291_v42 = vadd.f32 %v1163_v37, %v459_v21  ;;  %v724_v20 = vsub.f32 %v596_v12, %v468_v17  ;;  %v725_v21 = vsub.f32 %v597_v10, %v469_v47  ;;  %v480_v12 = vld [vmem:[%s2128_s30 + $0x1b0] sm:$0xff]  ;;  %v481_v10 = vld [vmem:[%s2128_s30 + $0x1b8] sm:$0xff] }
 0x1d9   : > { %v898_v38 = vpop.permute.xlu0 %897 }
 0x1da   : > { %1418 = vst [vmem:[%s2231_s4 + $0x100] sm:$0xff] %v1290_v41  ;;  %1419 = vst [vmem:[%s2231_s4 + $0x108] sm:$0xff] %v1291_v42  ;;  %v1164_v39 = vmul.f32 %v898_v38, %v716_v16  ;;  %v1165_v44 = vmul.f32 %v898_v38, %v717_v32  ;;  %v602_v41 = vld [vmem:[%s2210_s22 + $0x180] sm:$0xff]  ;;  %v603_v42 = vld [vmem:[%s2210_s22 + $0x188] sm:$0xff] }
 0x1dc   : > { %v1292_v46 = vadd.f32 %v1164_v39, %v460_v29  ;;  %v1293_v54 = vadd.f32 %v1165_v44, %v461_v30  ;;  %v726_v29 = vsub.f32 %v598_v24, %v470_v22  ;;  %v727_v30 = vsub.f32 %v599_v25, %v471_v23  ;;  %v482_v24 = vld [vmem:[%s2128_s30 + $0x1c0] sm:$0xff]  ;;  %v483_v25 = vld [vmem:[%s2128_s30 + $0x1c8] sm:$0xff] }
 0x1dd   : > { %v903_v56 = vpop.permute.xlu1 %902 }
 0x1de   : > { %1420 = vst [vmem:[%s2231_s4 + $0x110] sm:$0xff] %v1292_v46  ;;  %1421 = vst [vmem:[%s2231_s4 + $0x118] sm:$0xff] %v1293_v54  ;;  %v1166_v57 = vmul.f32 %v903_v56, %v718_v45  ;;  %v1167_v58 = vmul.f32 %v903_v56, %v719_v43  ;;  %v604_v46 = vld [vmem:[%s2210_s22 + $0x190] sm:$0xff]  ;;  %v605_v54 = vld [vmem:[%s2210_s22 + $0x198] sm:$0xff] }
 0x1e0   : > { %v1294_v6 = vadd.f32 %v1166_v57, %v462_v2  ;;  %v1295_v8 = vadd.f32 %v1167_v58, %v463_v0  ;;  %v728_v2 = vsub.f32 %v600_v27, %v472_v31  ;;  %v729_v0 = vsub.f32 %v601_v33, %v473_v26  ;;  %v484_v27 = vld [vmem:[%s2128_s30 + $0x1d0] sm:$0xff]  ;;  %v485_v33 = vld [vmem:[%s2128_s30 + $0x1d8] sm:$0xff] }
 0x1e1   : > { %v908_v9 = vpop.permute.xlu0 %907 }
 0x1e2   : > { %1422 = vst [vmem:[%s2231_s4 + $0x120] sm:$0xff] %v1294_v6  ;;  %1423 = vst [vmem:[%s2231_s4 + $0x128] sm:$0xff] %v1295_v8  ;;  %v1168_v49 = vmul.f32 %v908_v9, %v720_v7  ;;  %v1169_v63 = vmul.f32 %v908_v9, %v721_v5  ;;  %v606_v6 = vld [vmem:[%s2210_s22 + $0x1a0] sm:$0xff]  ;;  %v607_v8 = vld [vmem:[%s2210_s22 + $0x1a8] sm:$0xff] }
 0x1e4   : > { %v1296_v11 = vadd.f32 %v1168_v49, %v464_v55  ;;  %v1297_v61 = vadd.f32 %v1169_v63, %v465_v48  ;;  %v730_v55 = vsub.f32 %v602_v41, %v474_v35  ;;  %v731_v48 = vsub.f32 %v603_v42, %v475_v40  ;;  %v486_v41 = vld [vmem:[%s2128_s30 + $0x1e0] sm:$0xff]  ;;  %v487_v42 = vld [vmem:[%s2128_s30 + $0x1e8] sm:$0xff] }
 0x1e5   : > { %v913_v59 = vpop.permute.xlu1 %912 }
 0x1e6   : > { %1424 = vst [vmem:[%s2231_s4 + $0x130] sm:$0xff] %v1296_v11  ;;  %1425 = vst [vmem:[%s2231_s4 + $0x138] sm:$0xff] %v1297_v61  ;;  %v1170_v18 = vmul.f32 %v913_v59, %v722_v1  ;;  %v1171_v19 = vmul.f32 %v913_v59, %v723_v15  ;;  %v608_v11 = vld [vmem:[%s2210_s22 + $0x1b0] sm:$0xff]  ;;  %v609_v61 = vld [vmem:[%s2210_s22 + $0x1b8] sm:$0xff] }
 0x1e8   : > { %v1298_v51 = vadd.f32 %v1170_v18, %v466_v60  ;;  %v1299_v14 = vadd.f32 %v1171_v19, %v467_v62  ;;  %v732_v60 = vsub.f32 %v604_v46, %v476_v50  ;;  %v733_v62 = vsub.f32 %v605_v54, %v477_v52 }
 0x1e9   : > { %v918_v13 = vpop.permute.xlu0 %917 }
 0x1ea   : > { %1426 = vst [vmem:[%s2231_s4 + $0x140] sm:$0xff] %v1298_v51  ;;  %1427 = vst [vmem:[%s2231_s4 + $0x148] sm:$0xff] %v1299_v14  ;;  %v1172_v53 = vmul.f32 %v918_v13, %v724_v20  ;;  %v1173_v28 = vmul.f32 %v918_v13, %v725_v21  ;;  %v610_v51 = vld [vmem:[%s2210_s22 + $0x1c0] sm:$0xff]  ;;  %v611_v14 = vld [vmem:[%s2210_s22 + $0x1c8] sm:$0xff] }
 0x1ec   : > { %v1300_v34 = vadd.f32 %v1172_v53, %v468_v17  ;;  %v1301_v36 = vadd.f32 %v1173_v28, %v469_v47  ;;  %v734_v17 = vsub.f32 %v606_v6, %v478_v3  ;;  %v735_v47 = vsub.f32 %v607_v8, %v479_v4  ;;  %v2454_v6 = vld [vmem:[%s2128_s30 + $0x228] sm:$0xff] }
 0x1ed   : > { %v923_v37 = vpop.permute.xlu1 %922 }
 0x1ee   : > { %1428 = vst [vmem:[%s2231_s4 + $0x150] sm:$0xff] %v1300_v34  ;;  %1429 = vst [vmem:[%s2231_s4 + $0x158] sm:$0xff] %v1301_v36  ;;  %v1174_v16 = vmul.f32 %v923_v37, %v726_v29  ;;  %v1175_v32 = vmul.f32 %v923_v37, %v727_v30  ;;  %v612_v34 = vld [vmem:[%s2210_s22 + $0x1d0] sm:$0xff]  ;;  %v613_v36 = vld [vmem:[%s2210_s22 + $0x1d8] sm:$0xff] }
 0x1f0   : > { %v1302_v38 = vadd.f32 %v1174_v16, %v470_v22  ;;  %v1303_v39 = vadd.f32 %v1175_v32, %v471_v23  ;;  %v736_v22 = vsub.f32 %v608_v11, %v480_v12  ;;  %v737_v23 = vsub.f32 %v609_v61, %v481_v10  ;;  %v493_v11 = vld [vmem:[%s2128_s30 + $0x218] sm:$0xff]  ;;  %v620_v61 = vld [vmem:[%s2210_s22 + $0x210] sm:$0xff] }
 0x1f1   : > { %v928_v44 = vpop.permute.xlu0 %927 }
 0x1f2   : > { %1430 = vst [vmem:[%s2231_s4 + $0x160] sm:$0xff] %v1302_v38  ;;  %1431 = vst [vmem:[%s2231_s4 + $0x168] sm:$0xff] %v1303_v39  ;;  %v1176_v45 = vmul.f32 %v928_v44, %v728_v2  ;;  %v1177_v43 = vmul.f32 %v928_v44, %v729_v0  ;;  %v614_v38 = vld [vmem:[%s2210_s22 + $0x1e0] sm:$0xff]  ;;  %v615_v39 = vld [vmem:[%s2210_s22 + $0x1e8] sm:$0xff] }
 0x1f3   : > { %v742_v46 = vsub.f32 %v614_v38, %v486_v41  ;;  %v743_v54 = vsub.f32 %v615_v39, %v487_v42 }
 0x1f4   : > { %v1304_v56 = vadd.f32 %v1176_v45, %v472_v31  ;;  %v1305_v57 = vadd.f32 %v1177_v43, %v473_v26  ;;  %v738_v31 = vsub.f32 %v610_v51, %v482_v24  ;;  %v739_v26 = vsub.f32 %v611_v14, %v483_v25 }
 0x1f5   : > { %v933_v58 = vpop.permute.xlu1 %932 }
 0x1f6   : > { %1432 = vst [vmem:[%s2231_s4 + $0x170] sm:$0xff] %v1304_v56  ;;  %1433 = vst [vmem:[%s2231_s4 + $0x178] sm:$0xff] %v1305_v57  ;;  %v1178_v7 = vmul.f32 %v933_v58, %v730_v55  ;;  %v1179_v5 = vmul.f32 %v933_v58, %v731_v48  ;;  %v490_v55 = vld [vmem:[%s2128_s30 + $0x200] sm:$0xff]  ;;  %v491_v48 = vld [vmem:[%s2128_s30 + $0x208] sm:$0xff] }
 0x1f7   : > { %v618_v56 = vld [vmem:[%s2210_s22 + $0x200] sm:$0xff]  ;;  %v619_v57 = vld [vmem:[%s2210_s22 + $0x208] sm:$0xff]  ;;  %v488_v58 = vld [vmem:[%s2128_s30 + $0x1f0] sm:$0xff] }
 0x1f8   : > { %v1306_v9 = vadd.f32 %v1178_v7, %v474_v35  ;;  %v1307_v49 = vadd.f32 %v1179_v5, %v475_v40  ;;  %v740_v35 = vsub.f32 %v612_v34, %v484_v27  ;;  %v741_v40 = vsub.f32 %v613_v36, %v485_v33  ;;  %v489_v7 = vld [vmem:[%s2128_s30 + $0x1f8] sm:$0xff]  ;;  %v616_v5 = vld [vmem:[%s2210_s22 + $0x1f0] sm:$0xff] }
 0x1f9   : > { %v938_v63 = vpop.permute.xlu0 %937  ;;  %v625_v34 = vld [vmem:[%s2210_s22 + $0x238] sm:$0xff] }
 0x1fa   : > { %1434 = vst [vmem:[%s2231_s4 + $0x180] sm:$0xff] %v1306_v9  ;;  %1435 = vst [vmem:[%s2231_s4 + $0x188] sm:$0xff] %v1307_v49  ;;  %v1180_v1 = vmul.f32 %v938_v63, %v732_v60  ;;  %v1181_v15 = vmul.f32 %v938_v63, %v733_v62  ;;  %v617_v60 = vld [vmem:[%s2210_s22 + $0x1f8] sm:$0xff]  ;;  %v746_v9 = vsub.f32 %v618_v56, %v490_v55  ;;  %v622_v63 = vld [vmem:[%s2210_s22 + $0x220] sm:$0xff] }
 0x1fb   : > { %v747_v49 = vsub.f32 %v619_v57, %v491_v48  ;;  %v629_v56 = vld [vmem:[%s2210_s22 + $0x258] sm:$0xff] }
 0x1fc   : > { %v1308_v59 = vadd.f32 %v1180_v1, %v476_v50  ;;  %v1309_v18 = vadd.f32 %v1181_v15, %v477_v52  ;;  %v623_v1 = vld [vmem:[%s2210_s22 + $0x228] sm:$0xff]  ;;  %v492_v15 = vld [vmem:[%s2128_s30 + $0x210] sm:$0xff] }
 0x1fd   : > { %v943_v19 = vpop.permute.xlu1 %942  ;;  %v748_v51 = vsub.f32 %v620_v61, %v492_v15  ;;  %v632_v61 = vld [vmem:[%s2210_s22 + $0x270] sm:$0xff] }
 0x1fe   : > { %1436 = vst [vmem:[%s2231_s4 + $0x190] sm:$0xff] %v1308_v59  ;;  %1437 = vst [vmem:[%s2231_s4 + $0x198] sm:$0xff] %v1309_v18  ;;  %v1182_v20 = vmul.f32 %v943_v19, %v734_v17  ;;  %v1183_v21 = vmul.f32 %v943_v19, %v735_v47  ;;  %v621_v59 = vld [vmem:[%s2210_s22 + $0x218] sm:$0xff] }
 0x1ff   : > { %v749_v14 = vsub.f32 %v621_v59, %v493_v11  ;;  %v633_v59 = vld [vmem:[%s2210_s22 + $0x278] sm:$0xff] }
 0x200   : > { %v1310_v13 = vadd.f32 %v1182_v20, %v478_v3  ;;  %v1311_v53 = vadd.f32 %v1183_v21, %v479_v4  ;;  %v2451_v4 = vld [vmem:[%s2128_s30 + $0x220] sm:$0xff]  ;;  %v2468_v21 = vld [vmem:[%s2128_s30 + $0x248] sm:$0xff] }
 0x201   : > { %v948_v28 = vpop.permute.xlu0 %947  ;;  %v2465_v20 = vld [vmem:[%s2128_s30 + $0x240] sm:$0xff] }
 0x202   : > { %1438 = vst [vmem:[%s2231_s4 + $0x1a0] sm:$0xff] %v1310_v13  ;;  %1439 = vst [vmem:[%s2231_s4 + $0x1a8] sm:$0xff] %v1311_v53  ;;  %v1184_v29 = vmul.f32 %v948_v28, %v736_v22  ;;  %v1185_v30 = vmul.f32 %v948_v28, %v737_v23  ;;  %v626_v13 = vld [vmem:[%s2210_s22 + $0x240] sm:$0xff]  ;;  %v627_v53 = vld [vmem:[%s2210_s22 + $0x248] sm:$0xff] }
 0x203   : > { %v2475_v28 = vld [vmem:[%s2128_s30 + $0x230] sm:$0xff] }
 0x204   : > { %v1312_v37 = vadd.f32 %v1184_v29, %v480_v12  ;;  %v1313_v16 = vadd.f32 %v1185_v30, %v481_v10  ;;  %v744_v12 = vsub.f32 %v616_v5, %v488_v58  ;;  %v745_v10 = vsub.f32 %v617_v60, %v489_v7  ;;  %v2506_v60 = vld [vmem:[%s2128_s30 + $0x280] sm:$0xff] }
 0x205   : > { %v953_v32 = vpop.permute.xlu1 %952 }
 0x206   : > { %1440 = vst [vmem:[%s2231_s4 + $0x1b0] sm:$0xff] %v1312_v37  ;;  %1441 = vst [vmem:[%s2231_s4 + $0x1b8] sm:$0xff] %v1313_v16  ;;  %v1186_v2 = vmul.f32 %v953_v32, %v738_v31  ;;  %v1187_v0 = vmul.f32 %v953_v32, %v739_v26 }
 0x208   : > { %v1314_v44 = vadd.f32 %v1186_v2, %v482_v24  ;;  %v1315_v45 = vadd.f32 %v1187_v0, %v483_v25  ;;  %v750_v24 = vsub.f32 %v622_v63, %v2451_v4  ;;  %v751_v25 = vsub.f32 %v623_v1, %v2454_v6  ;;  %v2483_v2 = vld [vmem:[%s2128_s30 + $0x260] sm:$0xff]  ;;  %v2486_v0 = vld [vmem:[%s2128_s30 + $0x268] sm:$0xff] }
 0x209   : > { %v958_v43 = vpop.permute.xlu0 %957  ;;  %v634_v63 = vld [vmem:[%s2210_s22 + $0x280] sm:$0xff]  ;;  %v635_v1 = vld [vmem:[%s2210_s22 + $0x288] sm:$0xff] }
 0x20a   : > { %1442 = vst [vmem:[%s2231_s4 + $0x1c0] sm:$0xff] %v1314_v44  ;;  %1443 = vst [vmem:[%s2231_s4 + $0x1c8] sm:$0xff] %v1315_v45  ;;  %v1188_v50 = vmul.f32 %v958_v43, %v740_v35  ;;  %v1189_v52 = vmul.f32 %v958_v43, %v741_v40  ;;  %v630_v44 = vld [vmem:[%s2210_s22 + $0x260] sm:$0xff]  ;;  %v631_v45 = vld [vmem:[%s2210_s22 + $0x268] sm:$0xff] }
 0x20b   : > { %v2494_v43 = vld [vmem:[%s2128_s30 + $0x250] sm:$0xff] }
 0x20c   : > { %v1316_v62 = vadd.f32 %v1188_v50, %v484_v27  ;;  %v1317_v3 = vadd.f32 %v1189_v52, %v485_v33  ;;  %v497_v27 = vld [vmem:[%s2128_s30 + $0x238] sm:$0xff]  ;;  %v624_v33 = vld [vmem:[%s2210_s22 + $0x230] sm:$0xff] }
 0x20d   : > { %v963_v8 = vpop.permute.xlu1 %962  ;;  %v752_v38 = vsub.f32 %v624_v33, %v2475_v28  ;;  %v753_v39 = vsub.f32 %v625_v34, %v497_v27  ;;  %v509_v34 = vld [vmem:[%s2128_s30 + $0x298] sm:$0xff] }
 0x20e   : > { %1444 = vst [vmem:[%s2231_s4 + $0x1d0] sm:$0xff] %v1316_v62  ;;  %1445 = vst [vmem:[%s2231_s4 + $0x1d8] sm:$0xff] %v1317_v3  ;;  %v1190_v17 = vmul.f32 %v963_v8, %v742_v46  ;;  %v1191_v47 = vmul.f32 %v963_v8, %v743_v54  ;;  %v501_v46 = vld [vmem:[%s2128_s30 + $0x258] sm:$0xff]  ;;  %v628_v54 = vld [vmem:[%s2210_s22 + $0x250] sm:$0xff] }
 0x20f   : > { %v2509_v62 = vld [vmem:[%s2128_s30 + $0x288] sm:$0xff] }
 0x210   : > { %v1318_v18 = vadd.f32 %v1190_v17, %v486_v41  ;;  %v1319_v19 = vadd.f32 %v1191_v47, %v487_v42  ;;  %v754_v41 = vsub.f32 %v626_v13, %v2465_v20  ;;  %v755_v42 = vsub.f32 %v627_v53, %v2468_v21 }
 0x211   : > { %v973_v22 = vpop.permute.xlu1 %972  ;;  %v968_v23 = vpop.permute.xlu0 %967  ;;  %v762_v13 = vsub.f32 %v634_v63, %v2506_v60 }
 0x212   : > { %1446 = vst [vmem:[%s2231_s4 + $0x1e0] sm:$0xff] %v1318_v18  ;;  %1447 = vst [vmem:[%s2231_s4 + $0x1e8] sm:$0xff] %v1319_v19  ;;  %v1194_v29 = vmul.f32 %v973_v22, %v746_v9  ;;  %v1195_v30 = vmul.f32 %v973_v22, %v747_v49  ;;  %v1192_v31 = vmul.f32 %v968_v23, %v744_v12 }
 0x213   : > { %v1193_v26 = vmul.f32 %v968_v23, %v745_v10  ;;  %v758_v9 = vsub.f32 %v630_v44, %v2483_v2  ;;  %v759_v49 = vsub.f32 %v631_v45, %v2486_v0 }
 0x214   : > { %v1322_v36 = vadd.f32 %v1194_v29, %v490_v55  ;;  %v1323_v37 = vadd.f32 %v1195_v30, %v491_v48  ;;  %v1320_v16 = vadd.f32 %v1192_v31, %v488_v58  ;;  %v638_v29 = vld [vmem:[%s2210_s22 + $0x2a0] sm:$0xff]  ;;  %v2541_v30 = vld [vmem:[%s2128_s30 + $0x290] sm:$0xff] }
 0x215   : > { %v1321_v32 = vadd.f32 %v1193_v26, %v489_v7  ;;  %v983_v35 = vpop.permute.xlu1 %982  ;;  %v978_v40 = vpop.permute.xlu0 %977 }
 0x216   : > { %1450 = vst [vmem:[%s2231_s4 + $0x200] sm:$0xff] %v1322_v36  ;;  %1451 = vst [vmem:[%s2231_s4 + $0x208] sm:$0xff] %v1323_v37  ;;  %v1198_v55 = vmul.f32 %v983_v35, %v750_v24  ;;  %v1199_v48 = vmul.f32 %v983_v35, %v751_v25  ;;  %v1196_v50 = vmul.f32 %v978_v40, %v748_v51  ;;  %v2530_v24 = vld [vmem:[%s2128_s30 + $0x2a0] sm:$0xff]  ;;  %v2533_v25 = vld [vmem:[%s2128_s30 + $0x2a8] sm:$0xff] }
 0x217   : > { %1448 = vst [vmem:[%s2231_s4 + $0x1f0] sm:$0xff] %v1320_v16  ;;  %1449 = vst [vmem:[%s2231_s4 + $0x1f8] sm:$0xff] %v1321_v32  ;;  %v1197_v52 = vmul.f32 %v978_v40, %v749_v14  ;;  %v636_v36 = vld [vmem:[%s2210_s22 + $0x290] sm:$0xff]  ;;  %v637_v37 = vld [vmem:[%s2210_s22 + $0x298] sm:$0xff]  ;;  %v766_v44 = vsub.f32 %v638_v29, %v2530_v24 }
 0x218   : > { %v1326_v57 = vadd.f32 %v1198_v55, %v2451_v4  ;;  %v1327_v58 = vadd.f32 %v1199_v48, %v2454_v6  ;;  %v1324_v7 = vadd.f32 %v1196_v50, %v492_v15  ;;  %v756_v4 = vsub.f32 %v628_v54, %v2494_v43  ;;  %v2517_v15 = vld [vmem:[%s2128_s30 + $0x270] sm:$0xff]  ;;  %v642_v55 = vld [vmem:[%s2210_s22 + $0x2c0] sm:$0xff] }
 0x219   : > { %v1325_v5 = vadd.f32 %v1197_v52, %v493_v11  ;;  %v993_v3 = vpop.permute.xlu1 %992  ;;  %v988_v8 = vpop.permute.xlu0 %987  ;;  %v757_v6 = vsub.f32 %v629_v56, %v501_v46  ;;  %v505_v11 = vld [vmem:[%s2128_s30 + $0x278] sm:$0xff]  ;;  %v765_v45 = vsub.f32 %v637_v37, %v509_v34  ;;  %v2565_v48 = vld [vmem:[%s2128_s30 + $0x2b0] sm:$0xff] }
 0x21a   : > { %1454 = vst [vmem:[%s2231_s4 + $0x220] sm:$0xff] %v1326_v57  ;;  %1455 = vst [vmem:[%s2231_s4 + $0x228] sm:$0xff] %v1327_v58  ;;  %v1202_v17 = vmul.f32 %v993_v3, %v754_v41  ;;  %v1203_v47 = vmul.f32 %v993_v3, %v755_v42  ;;  %v1200_v12 = vmul.f32 %v988_v8, %v752_v38  ;;  %v2554_v41 = vld [vmem:[%s2128_s30 + $0x2c0] sm:$0xff]  ;;  %v2557_v42 = vld [vmem:[%s2128_s30 + $0x2c8] sm:$0xff] }
 0x21b   : > { %1452 = vst [vmem:[%s2231_s4 + $0x210] sm:$0xff] %v1324_v7  ;;  %1453 = vst [vmem:[%s2231_s4 + $0x218] sm:$0xff] %v1325_v5  ;;  %v1201_v10 = vmul.f32 %v988_v8, %v753_v39  ;;  %v761_v53 = vsub.f32 %v633_v59, %v505_v11  ;;  %v513_v56 = vld [vmem:[%s2128_s30 + $0x2b8] sm:$0xff]  ;;  %v640_v57 = vld [vmem:[%s2210_s22 + $0x2b0] sm:$0xff]  ;;  %v770_v63 = vsub.f32 %v642_v55, %v2554_v41 }
 0x21c   : > { %v1330_v18 = vadd.f32 %v1202_v17, %v2465_v20  ;;  %v1331_v19 = vadd.f32 %v1203_v47, %v2468_v21  ;;  %v1328_v22 = vadd.f32 %v1200_v12, %v2475_v28  ;;  %v763_v20 = vsub.f32 %v635_v1, %v2509_v62  ;;  %v639_v28 = vld [vmem:[%s2210_s22 + $0x2a8] sm:$0xff]  ;;  %v641_v58 = vld [vmem:[%s2210_s22 + $0x2b8] sm:$0xff]  ;;  %v646_v17 = vld [vmem:[%s2210_s22 + $0x2e0] sm:$0xff] }
 0x21d   : > { %v1329_v23 = vadd.f32 %v1201_v10, %v497_v27  ;;  %v1003_v51 = vpop.permute.xlu1 %1002  ;;  %v998_v14 = vpop.permute.xlu0 %997  ;;  %v760_v21 = vsub.f32 %v632_v61, %v2517_v15  ;;  %v769_v1 = vsub.f32 %v641_v58, %v513_v56  ;;  %v2589_v47 = vld [vmem:[%s2128_s30 + $0x2d0] sm:$0xff]  ;;  %v517_v59 = vld [vmem:[%s2128_s30 + $0x2d8] sm:$0xff] }
 0x21e   : > { %1458 = vst [vmem:[%s2231_s4 + $0x240] sm:$0xff] %v1330_v18  ;;  %1459 = vst [vmem:[%s2231_s4 + $0x248] sm:$0xff] %v1331_v19  ;;  %v1206_v31 = vmul.f32 %v1003_v51, %v758_v9  ;;  %v1207_v26 = vmul.f32 %v1003_v51, %v759_v49  ;;  %v1204_v27 = vmul.f32 %v998_v14, %v756_v4  ;;  %v2578_v9 = vld [vmem:[%s2128_s30 + $0x2e0] sm:$0xff]  ;;  %v2581_v49 = vld [vmem:[%s2128_s30 + $0x2e8] sm:$0xff] }
 0x21f   : > { %1456 = vst [vmem:[%s2231_s4 + $0x230] sm:$0xff] %v1328_v22  ;;  %1457 = vst [vmem:[%s2231_s4 + $0x238] sm:$0xff] %v1329_v23  ;;  %v1205_v33 = vmul.f32 %v998_v14, %v757_v6  ;;  %v644_v18 = vld [vmem:[%s2210_s22 + $0x2d0] sm:$0xff]  ;;  %v645_v19 = vld [vmem:[%s2210_s22 + $0x2d8] sm:$0xff]  ;;  %v774_v29 = vsub.f32 %v646_v17, %v2578_v9 }
 0x220   : > { %v1334_v16 = vadd.f32 %v1206_v31, %v2483_v2  ;;  %v1335_v32 = vadd.f32 %v1207_v26, %v2486_v0  ;;  %v1332_v35 = vadd.f32 %v1204_v27, %v2494_v43  ;;  %v767_v2 = vsub.f32 %v639_v28, %v2533_v25  ;;  %v643_v43 = vld [vmem:[%s2210_s22 + $0x2c8] sm:$0xff]  ;;  %v650_v31 = vld [vmem:[%s2210_s22 + $0x300] sm:$0xff]  ;;  %v2613_v26 = vld [vmem:[%s2128_s30 + $0x2f0] sm:$0xff] }
 0x221   : > { %v1333_v40 = vadd.f32 %v1205_v33, %v501_v46  ;;  %v1013_v38 = vpop.permute.xlu1 %1012  ;;  %v1008_v39 = vpop.permute.xlu0 %1007  ;;  %v764_v0 = vsub.f32 %v636_v36, %v2541_v30  ;;  %v773_v28 = vsub.f32 %v645_v19, %v517_v59  ;;  %v521_v37 = vld [vmem:[%s2128_s30 + $0x2f8] sm:$0xff] }
 0x222   : > { %1462 = vst [vmem:[%s2231_s4 + $0x260] sm:$0xff] %v1334_v16  ;;  %1463 = vst [vmem:[%s2231_s4 + $0x268] sm:$0xff] %v1335_v32  ;;  %v1210_v50 = vmul.f32 %v1013_v38, %v762_v13  ;;  %v1211_v52 = vmul.f32 %v1013_v38, %v763_v20  ;;  %v1208_v46 = vmul.f32 %v1008_v39, %v760_v21  ;;  %v2602_v13 = vld [vmem:[%s2128_s30 + $0x300] sm:$0xff]  ;;  %v2605_v20 = vld [vmem:[%s2128_s30 + $0x308] sm:$0xff] }
 0x223   : > { %1460 = vst [vmem:[%s2231_s4 + $0x250] sm:$0xff] %v1332_v35  ;;  %1461 = vst [vmem:[%s2231_s4 + $0x258] sm:$0xff] %v1333_v40  ;;  %v1209_v54 = vmul.f32 %v1008_v39, %v761_v53  ;;  %v648_v16 = vld [vmem:[%s2210_s22 + $0x2f0] sm:$0xff]  ;;  %v649_v32 = vld [vmem:[%s2210_s22 + $0x2f8] sm:$0xff]  ;;  %v778_v55 = vsub.f32 %v650_v31, %v2602_v13 }
 0x224   : > { %v1338_v7 = vadd.f32 %v1210_v50, %v2506_v60  ;;  %v1339_v5 = vadd.f32 %v1211_v52, %v2509_v62  ;;  %v1336_v3 = vadd.f32 %v1208_v46, %v2517_v15  ;;  %v771_v60 = vsub.f32 %v643_v43, %v2557_v42  ;;  %v647_v15 = vld [vmem:[%s2210_s22 + $0x2e8] sm:$0xff]  ;;  %v654_v50 = vld [vmem:[%s2210_s22 + $0x320] sm:$0xff]  ;;  %v2637_v52 = vld [vmem:[%s2128_s30 + $0x310] sm:$0xff] }
 0x225   : > { %v1337_v8 = vadd.f32 %v1209_v54, %v505_v11  ;;  %v1023_v4 = vpop.permute.xlu1 %1022  ;;  %v1018_v6 = vpop.permute.xlu0 %1017  ;;  %v768_v62 = vsub.f32 %v640_v57, %v2565_v48  ;;  %v777_v43 = vsub.f32 %v649_v32, %v521_v37  ;;  %v525_v58 = vld [vmem:[%s2128_s30 + $0x318] sm:$0xff] }
 0x226   : > { %1466 = vst [vmem:[%s2231_s4 + $0x280] sm:$0xff] %v1338_v7  ;;  %1467 = vst [vmem:[%s2231_s4 + $0x288] sm:$0xff] %v1339_v5  ;;  %v1214_v12 = vmul.f32 %v1023_v4, %v766_v44  ;;  %v1215_v10 = vmul.f32 %v1023_v4, %v767_v2  ;;  %v1212_v11 = vmul.f32 %v1018_v6, %v764_v0  ;;  %v2626_v44 = vld [vmem:[%s2128_s30 + $0x320] sm:$0xff]  ;;  %v2629_v2 = vld [vmem:[%s2128_s30 + $0x328] sm:$0xff] }
 0x227   : > { %1464 = vst [vmem:[%s2231_s4 + $0x270] sm:$0xff] %v1336_v3  ;;  %1465 = vst [vmem:[%s2231_s4 + $0x278] sm:$0xff] %v1337_v8  ;;  %v1213_v61 = vmul.f32 %v1018_v6, %v765_v45  ;;  %v652_v7 = vld [vmem:[%s2210_s22 + $0x310] sm:$0xff]  ;;  %v653_v5 = vld [vmem:[%s2210_s22 + $0x318] sm:$0xff]  ;;  %v782_v17 = vsub.f32 %v654_v50, %v2626_v44 }
 0x228   : > { %v1342_v22 = vadd.f32 %v1214_v12, %v2530_v24  ;;  %v1343_v23 = vadd.f32 %v1215_v10, %v2533_v25  ;;  %v1340_v51 = vadd.f32 %v1212_v11, %v2541_v30  ;;  %v775_v24 = vsub.f32 %v647_v15, %v2581_v49  ;;  %v651_v30 = vld [vmem:[%s2210_s22 + $0x308] sm:$0xff]  ;;  %v658_v12 = vld [vmem:[%s2210_s22 + $0x340] sm:$0xff]  ;;  %v2661_v10 = vld [vmem:[%s2128_s30 + $0x330] sm:$0xff] }
 0x229   : > { %v1341_v14 = vadd.f32 %v1213_v61, %v509_v34  ;;  %v1033_v21 = vpop.permute.xlu1 %1032  ;;  %v1028_v53 = vpop.permute.xlu0 %1027  ;;  %v772_v25 = vsub.f32 %v644_v18, %v2589_v47  ;;  %v781_v15 = vsub.f32 %v653_v5, %v525_v58  ;;  %v529_v19 = vld [vmem:[%s2128_s30 + $0x338] sm:$0xff] }
 0x22a   : > { %1470 = vst [vmem:[%s2231_s4 + $0x2a0] sm:$0xff] %v1342_v22  ;;  %1471 = vst [vmem:[%s2231_s4 + $0x2a8] sm:$0xff] %v1343_v23  ;;  %v1218_v27 = vmul.f32 %v1033_v21, %v770_v63  ;;  %v1219_v33 = vmul.f32 %v1033_v21, %v771_v60  ;;  %v1216_v34 = vmul.f32 %v1028_v53, %v768_v62  ;;  %v2650_v63 = vld [vmem:[%s2128_s30 + $0x340] sm:$0xff]  ;;  %v2653_v60 = vld [vmem:[%s2128_s30 + $0x348] sm:$0xff] }
 0x22b   : > { %1468 = vst [vmem:[%s2231_s4 + $0x290] sm:$0xff] %v1340_v51  ;;  %1469 = vst [vmem:[%s2231_s4 + $0x298] sm:$0xff] %v1341_v14  ;;  %v1217_v36 = vmul.f32 %v1028_v53, %v769_v1  ;;  %v656_v22 = vld [vmem:[%s2210_s22 + $0x330] sm:$0xff]  ;;  %v657_v23 = vld [vmem:[%s2210_s22 + $0x338] sm:$0xff]  ;;  %v786_v31 = vsub.f32 %v658_v12, %v2650_v63 }
 0x22c   : > { %v1346_v35 = vadd.f32 %v1218_v27, %v2554_v41  ;;  %v1347_v40 = vadd.f32 %v1219_v33, %v2557_v42  ;;  %v1344_v38 = vadd.f32 %v1216_v34, %v2565_v48  ;;  %v779_v41 = vsub.f32 %v651_v30, %v2605_v20  ;;  %v655_v48 = vld [vmem:[%s2210_s22 + $0x328] sm:$0xff]  ;;  %v662_v27 = vld [vmem:[%s2210_s22 + $0x360] sm:$0xff]  ;;  %v2685_v33 = vld [vmem:[%s2128_s30 + $0x350] sm:$0xff] }
 0x22d   : > { %v1345_v39 = vadd.f32 %v1217_v36, %v513_v56  ;;  %v1043_v0 = vpop.permute.xlu1 %1042  ;;  %v1038_v45 = vpop.permute.xlu0 %1037  ;;  %v776_v42 = vsub.f32 %v648_v16, %v2613_v26  ;;  %v785_v30 = vsub.f32 %v657_v23, %v529_v19  ;;  %v533_v32 = vld [vmem:[%s2128_s30 + $0x358] sm:$0xff] }
 0x22e   : > { %1474 = vst [vmem:[%s2231_s4 + $0x2c0] sm:$0xff] %v1346_v35  ;;  %1475 = vst [vmem:[%s2231_s4 + $0x2c8] sm:$0xff] %v1347_v40  ;;  %v1222_v46 = vmul.f32 %v1043_v0, %v774_v29  ;;  %v1223_v54 = vmul.f32 %v1043_v0, %v775_v24  ;;  %v1220_v56 = vmul.f32 %v1038_v45, %v772_v25  ;;  %v2674_v29 = vld [vmem:[%s2128_s30 + $0x360] sm:$0xff]  ;;  %v2677_v24 = vld [vmem:[%s2128_s30 + $0x368] sm:$0xff] }
 0x22f   : > { %1472 = vst [vmem:[%s2231_s4 + $0x2b0] sm:$0xff] %v1344_v38  ;;  %1473 = vst [vmem:[%s2231_s4 + $0x2b8] sm:$0xff] %v1345_v39  ;;  %v1221_v57 = vmul.f32 %v1038_v45, %v773_v28  ;;  %v660_v35 = vld [vmem:[%s2210_s22 + $0x350] sm:$0xff]  ;;  %v661_v40 = vld [vmem:[%s2210_s22 + $0x358] sm:$0xff]  ;;  %v790_v50 = vsub.f32 %v662_v27, %v2674_v29 }
 0x230   : > { %v1350_v3 = vadd.f32 %v1222_v46, %v2578_v9  ;;  %v1351_v8 = vadd.f32 %v1223_v54, %v2581_v49  ;;  %v1348_v4 = vadd.f32 %v1220_v56, %v2589_v47  ;;  %v783_v9 = vsub.f32 %v655_v48, %v2629_v2  ;;  %v659_v47 = vld [vmem:[%s2210_s22 + $0x348] sm:$0xff]  ;;  %v666_v46 = vld [vmem:[%s2210_s22 + $0x380] sm:$0xff]  ;;  %v2709_v54 = vld [vmem:[%s2128_s30 + $0x370] sm:$0xff] }
 0x231   : > { %v1349_v6 = vadd.f32 %v1221_v57, %v517_v59  ;;  %v1053_v62 = vpop.permute.xlu1 %1052  ;;  %v1048_v1 = vpop.permute.xlu0 %1047  ;;  %v780_v49 = vsub.f32 %v652_v7, %v2637_v52  ;;  %v789_v48 = vsub.f32 %v661_v40, %v533_v32  ;;  %v537_v5 = vld [vmem:[%s2128_s30 + $0x378] sm:$0xff] }
 0x232   : > { %1478 = vst [vmem:[%s2231_s4 + $0x2e0] sm:$0xff] %v1350_v3  ;;  %1479 = vst [vmem:[%s2231_s4 + $0x2e8] sm:$0xff] %v1351_v8  ;;  %v1226_v11 = vmul.f32 %v1053_v62, %v778_v55  ;;  %v1227_v61 = vmul.f32 %v1053_v62, %v779_v41  ;;  %v1224_v59 = vmul.f32 %v1048_v1, %v776_v42  ;;  %v2698_v55 = vld [vmem:[%s2128_s30 + $0x380] sm:$0xff]  ;;  %v2701_v41 = vld [vmem:[%s2128_s30 + $0x388] sm:$0xff] }
 0x233   : > { %1476 = vst [vmem:[%s2231_s4 + $0x2d0] sm:$0xff] %v1348_v4  ;;  %1477 = vst [vmem:[%s2231_s4 + $0x2d8] sm:$0xff] %v1349_v6  ;;  %v1225_v18 = vmul.f32 %v1048_v1, %v777_v43  ;;  %v664_v3 = vld [vmem:[%s2210_s22 + $0x370] sm:$0xff]  ;;  %v665_v8 = vld [vmem:[%s2210_s22 + $0x378] sm:$0xff]  ;;  %v794_v12 = vsub.f32 %v666_v46, %v2698_v55 }
 0x234   : > { %v1354_v51 = vadd.f32 %v1226_v11, %v2602_v13  ;;  %v1355_v14 = vadd.f32 %v1227_v61, %v2605_v20  ;;  %v1352_v21 = vadd.f32 %v1224_v59, %v2613_v26  ;;  %v787_v13 = vsub.f32 %v659_v47, %v2653_v60  ;;  %v663_v26 = vld [vmem:[%s2210_s22 + $0x368] sm:$0xff]  ;;  %v670_v11 = vld [vmem:[%s2210_s22 + $0x3a0] sm:$0xff]  ;;  %v2733_v61 = vld [vmem:[%s2128_s30 + $0x390] sm:$0xff] }
 0x235   : > { %v1353_v53 = vadd.f32 %v1225_v18, %v521_v37  ;;  %v1063_v25 = vpop.permute.xlu1 %1062  ;;  %v1058_v28 = vpop.permute.xlu0 %1057  ;;  %v784_v20 = vsub.f32 %v656_v22, %v2661_v10  ;;  %v793_v47 = vsub.f32 %v665_v8, %v537_v5  ;;  %v541_v23 = vld [vmem:[%s2128_s30 + $0x398] sm:$0xff] }
 0x236   : > { %1482 = vst [vmem:[%s2231_s4 + $0x300] sm:$0xff] %v1354_v51  ;;  %1483 = vst [vmem:[%s2231_s4 + $0x308] sm:$0xff] %v1355_v14  ;;  %v1230_v34 = vmul.f32 %v1063_v25, %v782_v17  ;;  %v1231_v36 = vmul.f32 %v1063_v25, %v783_v9  ;;  %v1228_v37 = vmul.f32 %v1058_v28, %v780_v49  ;;  %v2722_v17 = vld [vmem:[%s2128_s30 + $0x3a0] sm:$0xff]  ;;  %v2725_v9 = vld [vmem:[%s2128_s30 + $0x3a8] sm:$0xff] }
 0x237   : > { %1480 = vst [vmem:[%s2231_s4 + $0x2f0] sm:$0xff] %v1352_v21  ;;  %1481 = vst [vmem:[%s2231_s4 + $0x2f8] sm:$0xff] %v1353_v53  ;;  %v1229_v16 = vmul.f32 %v1058_v28, %v781_v15  ;;  %v668_v51 = vld [vmem:[%s2210_s22 + $0x390] sm:$0xff]  ;;  %v669_v14 = vld [vmem:[%s2210_s22 + $0x398] sm:$0xff]  ;;  %v798_v27 = vsub.f32 %v670_v11, %v2722_v17 }
 0x238   : > { %v1358_v38 = vadd.f32 %v1230_v34, %v2626_v44  ;;  %v1359_v39 = vadd.f32 %v1231_v36, %v2629_v2  ;;  %v1356_v0 = vadd.f32 %v1228_v37, %v2637_v52  ;;  %v791_v44 = vsub.f32 %v663_v26, %v2677_v24  ;;  %v667_v52 = vld [vmem:[%s2210_s22 + $0x388] sm:$0xff]  ;;  %v674_v34 = vld [vmem:[%s2210_s22 + $0x3c0] sm:$0xff]  ;;  %v544_v36 = vld [vmem:[%s2128_s30 + $0x3b0] sm:$0xff] }
 0x239   : > { %v1357_v45 = vadd.f32 %v1229_v16, %v525_v58  ;;  %v1073_v42 = vpop.permute.xlu1 %1072  ;;  %v1068_v43 = vpop.permute.xlu0 %1067  ;;  %v788_v2 = vsub.f32 %v660_v35, %v2685_v33  ;;  %v797_v26 = vsub.f32 %v669_v14, %v541_v23  ;;  %v545_v40 = vld [vmem:[%s2128_s30 + $0x3b8] sm:$0xff] }
 0x23a   : > { %1486 = vst [vmem:[%s2231_s4 + $0x320] sm:$0xff] %v1358_v38  ;;  %1487 = vst [vmem:[%s2231_s4 + $0x328] sm:$0xff] %v1359_v39  ;;  %v1234_v56 = vmul.f32 %v1073_v42, %v786_v31  ;;  %v1235_v57 = vmul.f32 %v1073_v42, %v787_v13  ;;  %v1232_v58 = vmul.f32 %v1068_v43, %v784_v20  ;;  %v2746_v31 = vld [vmem:[%s2128_s30 + $0x3c0] sm:$0xff]  ;;  %v2749_v13 = vld [vmem:[%s2128_s30 + $0x3c8] sm:$0xff] }
 0x23b   : > { %1484 = vst [vmem:[%s2231_s4 + $0x310] sm:$0xff] %v1356_v0  ;;  %1485 = vst [vmem:[%s2231_s4 + $0x318] sm:$0xff] %v1357_v45  ;;  %v1233_v7 = vmul.f32 %v1068_v43, %v785_v30  ;;  %v672_v38 = vld [vmem:[%s2210_s22 + $0x3b0] sm:$0xff]  ;;  %v673_v39 = vld [vmem:[%s2210_s22 + $0x3b8] sm:$0xff]  ;;  %v802_v46 = vsub.f32 %v674_v34, %v2746_v31 }
 0x23c   : > { %v1362_v4 = vadd.f32 %v1234_v56, %v2650_v63  ;;  %v1363_v6 = vadd.f32 %v1235_v57, %v2653_v60  ;;  %v1360_v62 = vadd.f32 %v1232_v58, %v2661_v10  ;;  %v795_v63 = vsub.f32 %v667_v52, %v2701_v41  ;;  %v671_v10 = vld [vmem:[%s2210_s22 + $0x3a8] sm:$0xff]  ;;  %v678_v57 = vld [vmem:[%s2210_s22 + $0x3e0] sm:$0xff]  ;;  %v548_v58 = vld [vmem:[%s2128_s30 + $0x3d0] sm:$0xff] }
 0x23d   : > { %v1361_v1 = vadd.f32 %v1233_v7, %v529_v19  ;;  %v1083_v49 = vpop.permute.xlu1 %1082  ;;  %v1078_v15 = vpop.permute.xlu0 %1077  ;;  %v792_v60 = vsub.f32 %v664_v3, %v2709_v54  ;;  %v801_v56 = vsub.f32 %v673_v39, %v545_v40  ;;  %v549_v8 = vld [vmem:[%s2128_s30 + $0x3d8] sm:$0xff] }
 0x23e   : > { %1490 = vst [vmem:[%s2231_s4 + $0x340] sm:$0xff] %v1362_v4  ;;  %1491 = vst [vmem:[%s2231_s4 + $0x348] sm:$0xff] %v1363_v6  ;;  %v1238_v59 = vmul.f32 %v1083_v49, %v790_v50  ;;  %v1239_v18 = vmul.f32 %v1083_v49, %v791_v44  ;;  %v1236_v19 = vmul.f32 %v1078_v15, %v788_v2  ;;  %v550_v50 = vld [vmem:[%s2128_s30 + $0x3e0] sm:$0xff]  ;;  %v551_v44 = vld [vmem:[%s2128_s30 + $0x3e8] sm:$0xff] }
 0x23f   : > { %1488 = vst [vmem:[%s2231_s4 + $0x330] sm:$0xff] %v1360_v62  ;;  %1489 = vst [vmem:[%s2231_s4 + $0x338] sm:$0xff] %v1361_v1  ;;  %v1237_v22 = vmul.f32 %v1078_v15, %v789_v48  ;;  %v676_v4 = vld [vmem:[%s2210_s22 + $0x3d0] sm:$0xff]  ;;  %v677_v6 = vld [vmem:[%s2210_s22 + $0x3d8] sm:$0xff] }
 0x240   : > { %v1366_v21 = vadd.f32 %v1238_v59, %v2674_v29  ;;  %v1367_v53 = vadd.f32 %v1239_v18, %v2677_v24  ;;  %v1364_v25 = vadd.f32 %v1236_v19, %v2685_v33  ;;  %v799_v29 = vsub.f32 %v671_v10, %v2725_v9  ;;  %v675_v33 = vld [vmem:[%s2210_s22 + $0x3c8] sm:$0xff]  ;;  %v552_v59 = vld [vmem:[%s2128_s30 + $0x3f0] sm:$0xff]  ;;  %v553_v19 = vld [vmem:[%s2128_s30 + $0x3f8] sm:$0xff] }
 0x241   : > { %v1365_v28 = vadd.f32 %v1237_v22, %v533_v32  ;;  %v1093_v20 = vpop.permute.xlu1 %1092  ;;  %v1088_v30 = vpop.permute.xlu0 %1087  ;;  %v796_v24 = vsub.f32 %v668_v51, %v2733_v61  ;;  %v803_v52 = vsub.f32 %v675_v33, %v2749_v13  ;;  %v804_v11 = vsub.f32 %v676_v4, %v548_v58  ;;  %v680_v22 = vld [vmem:[%s2210_s22 + $0x3f0] sm:$0xff] }
 0x242   : > { %1494 = vst [vmem:[%s2231_s4 + $0x360] sm:$0xff] %v1366_v21  ;;  %1495 = vst [vmem:[%s2231_s4 + $0x368] sm:$0xff] %v1367_v53  ;;  %v1242_v37 = vmul.f32 %v1093_v20, %v794_v12  ;;  %v1243_v16 = vmul.f32 %v1093_v20, %v795_v63  ;;  %v1240_v32 = vmul.f32 %v1088_v30, %v792_v60 }
 0x243   : > { %1492 = vst [vmem:[%s2231_s4 + $0x350] sm:$0xff] %v1364_v25  ;;  %1493 = vst [vmem:[%s2231_s4 + $0x358] sm:$0xff] %v1365_v28  ;;  %v1241_v35 = vmul.f32 %v1088_v30, %v793_v47  ;;  %v806_v60 = vsub.f32 %v678_v57, %v550_v50  ;;  %v805_v10 = vsub.f32 %v677_v6, %v549_v8 }
 0x244   : > { %v1370_v0 = vadd.f32 %v1242_v37, %v2698_v55  ;;  %v1371_v45 = vadd.f32 %v1243_v16, %v2701_v41  ;;  %v1368_v42 = vadd.f32 %v1240_v32, %v2709_v54  ;;  %v800_v55 = vsub.f32 %v672_v38, %v544_v36  ;;  %v679_v41 = vld [vmem:[%s2210_s22 + $0x3e8] sm:$0xff] }
 0x245   : > { %v1369_v43 = vadd.f32 %v1241_v35, %v537_v5  ;;  %v1103_v2 = vpop.permute.xlu1 %1102  ;;  %v1098_v48 = vpop.permute.xlu0 %1097  ;;  %v807_v47 = vsub.f32 %v679_v41, %v551_v44  ;;  %v808_v20 = vsub.f32 %v680_v22, %v552_v59 }
 0x246   : > { %1498 = vst [vmem:[%s2231_s4 + $0x380] sm:$0xff] %v1370_v0  ;;  %1499 = vst [vmem:[%s2231_s4 + $0x388] sm:$0xff] %v1371_v45  ;;  %v1246_v54 = vmul.f32 %v1103_v2, %v798_v27  ;;  %v1247_v7 = vmul.f32 %v1103_v2, %v799_v29  ;;  %v1244_v5 = vmul.f32 %v1098_v48, %v796_v24 }
 0x247   : > { %1496 = vst [vmem:[%s2231_s4 + $0x370] sm:$0xff] %v1368_v42  ;;  %1497 = vst [vmem:[%s2231_s4 + $0x378] sm:$0xff] %v1369_v43  ;;  %v1245_v3 = vmul.f32 %v1098_v48, %v797_v26 }
 0x248   : > { %v1374_v62 = vadd.f32 %v1246_v54, %v2722_v17  ;;  %v1375_v1 = vadd.f32 %v1247_v7, %v2725_v9  ;;  %v1372_v49 = vadd.f32 %v1244_v5, %v2733_v61 }
 0x249   : > { %v1373_v15 = vadd.f32 %v1245_v3, %v541_v23  ;;  %v1113_v12 = vpop.permute.xlu1 %1112  ;;  %v1108_v63 = vpop.permute.xlu0 %1107  ;;  %v681_v23 = vld [vmem:[%s2210_s22 + $0x3f8] sm:$0xff] }
 0x24a   : > { %1502 = vst [vmem:[%s2231_s4 + $0x3a0] sm:$0xff] %v1374_v62  ;;  %1503 = vst [vmem:[%s2231_s4 + $0x3a8] sm:$0xff] %v1375_v1  ;;  %v1250_v17 = vmul.f32 %v1113_v12, %v802_v46  ;;  %v1251_v9 = vmul.f32 %v1113_v12, %v803_v52  ;;  %v1248_v61 = vmul.f32 %v1108_v63, %v800_v55 }
 0x24b   : > { %1500 = vst [vmem:[%s2231_s4 + $0x390] sm:$0xff] %v1372_v49  ;;  %1501 = vst [vmem:[%s2231_s4 + $0x398] sm:$0xff] %v1373_v15  ;;  %v1249_v18 = vmul.f32 %v1108_v63, %v801_v56  ;;  %v809_v30 = vsub.f32 %v681_v23, %v553_v19 }
 0x24c   : > { %v1378_v51 = vadd.f32 %v1250_v17, %v2746_v31  ;;  %v1379_v14 = vadd.f32 %v1251_v9, %v2749_v13  ;;  %v1376_v21 = vadd.f32 %v1248_v61, %v544_v36 }
 0x24d   : > { %v1377_v53 = vadd.f32 %v1249_v18, %v545_v40  ;;  %v1123_v25 = vpop.permute.xlu1 %1122  ;;  %v1118_v28 = vpop.permute.xlu0 %1117 }
 0x24e   : > { %1506 = vst [vmem:[%s2231_s4 + $0x3c0] sm:$0xff] %v1378_v51  ;;  %1507 = vst [vmem:[%s2231_s4 + $0x3c8] sm:$0xff] %v1379_v14  ;;  %v1254_v27 = vmul.f32 %v1123_v25, %v806_v60  ;;  %v1255_v31 = vmul.f32 %v1123_v25, %v807_v47  ;;  %v1252_v29 = vmul.f32 %v1118_v28, %v804_v11 }
 0x24f   : > { %1504 = vst [vmem:[%s2231_s4 + $0x3b0] sm:$0xff] %v1376_v21  ;;  %1505 = vst [vmem:[%s2231_s4 + $0x3b8] sm:$0xff] %v1377_v53  ;;  %v1253_v13 = vmul.f32 %v1118_v28, %v805_v10 }
 0x250   : > { %v1382_v24 = vadd.f32 %v1254_v27, %v550_v50  ;;  %v1383_v26 = vadd.f32 %v1255_v31, %v551_v44  ;;  %v1380_v34 = vadd.f32 %v1252_v29, %v548_v58 }
 0x251   : > { %v1381_v33 = vadd.f32 %v1253_v13, %v549_v8  ;;  %v1128_v36 = vpop.permute.xlu0 %1127 }
 0x252   : > { %1510 = vst [vmem:[%s2231_s4 + $0x3e0] sm:$0xff] %v1382_v24  ;;  %1511 = vst [vmem:[%s2231_s4 + $0x3e8] sm:$0xff] %v1383_v26  ;;  %v1256_v37 = vmul.f32 %v1128_v36, %v808_v20  ;;  %v1257_v16 = vmul.f32 %v1128_v36, %v809_v30 }
 0x253   : > { %1508 = vst [vmem:[%s2231_s4 + $0x3d0] sm:$0xff] %v1380_v34  ;;  %1509 = vst [vmem:[%s2231_s4 + $0x3d8] sm:$0xff] %v1381_v33 }
 0x254   : > { %v1384_v32 = vadd.f32 %v1256_v37, %v552_v59  ;;  %v1385_v35 = vadd.f32 %v1257_v16, %v553_v19 }
 0x256   : > { %1512 = vst [vmem:[%s2231_s4 + $0x3f0] sm:$0xff] %v1384_v32  ;;  %1513 = vst [vmem:[%s2231_s4 + $0x3f8] sm:$0xff] %v1385_v35 }
 0x257   : > { %1849 = shalt.err (!%p1846_p8)
}
 0x258   : > { %s1850_s7 = scalar_lea.hbm %s2807_s19, 16384  ;;  %s1854_s17 = scalar_lea.hbm %s2858_s3, 32768 }
 0x259   : > { %p1851_p7 = scmp.ne.s32.totalorder %s2807_s19, %s1850_s7  ;;  %p1855_p11 = scmp.lt.u32.totalorder %s2807_s19, %s2858_s3 }
 0x25a   : > { %p1856_p1 = scmp.lt.u32.totalorder %s1854_s17, %s1850_s7  ;;  %p1858_p10 = scmp.lt.u32.totalorder %s1850_s7, %s2807_s19 }
 0x25b   : > { %p1852_p0 = pnand %p1851_p7, %p2879_p4 }
 0x25c   : > { %p1857_p2 = por %p1856_p1, %p1855_p11 }
 0x25d   : > { %p1853_p13 = pneg %p1852_p0 }
 0x25e   : > { %p1859_p5 = por %p1858_p10, %p1857_p2 }
 0x260   : > { %p1860_p6 = pnand %p1859_p5, %p1853_p13 }
 0x262   : > { %1863 = shalt.err (!%p1860_p6)
}
 0x263   : > { %s1915_s8 = smov 256   ;;  %s1916_s30 = smov 16  }
 0x264   : > { %1684 = dma.vmem_to_hbm [thread:$0]  (%p2879_p4), %s2809_s27, 16384, %s2807_s19, %s1515_s16, %s1915_s8, %s1915_s8, %s1916_s30  }
 0x265 PF: > { %s1544_s22 = sand.u32 1, %s1894_s12   ;;  %p2880_p9 = scmp.ne.s32.totalorder %s2869_s24, 0 }
 0x266   : > { %p2881_p12 = scmp.ge.s32.totalorder %s1906_s15, 2  ;;  %s1545_s4 = scalar_lea.sflag [#allocation4], %s1544_s22 }
 0x268   : > { %p1697_p3 = pnand %p2881_p12, %p2880_p9 }
 0x26a   : > { %1889 = dma.done.wait (!%p1697_p3), %s1545_s4, 16384  }
 0x26b   : > { %1891 = vsyncadd (!%p1697_p3), %s1545_s4, 4294950912  ;;  %s2882_s28 = sld [smem:[#allocation12_spill]]  ;;  %p19_p8 = scmp.ge.s32.totalorder %s1962_s18, 4  }
 0x26c   : > { %s2883_s12 = smov %s1898_s13  ;;  %s2884_s13 = smov %s1902_s14 }
 0x26d   : > { %s2886_s15 = smov %s1962_s18  ;;  %21 = sbr.rel (!%p19_p8) target bundleno = 9 (0x9), region = 101 }
 0x271   : > { %s2885_s14 = smov %s2882_s28 }
 0x274   :  { %1550 = vsyncpa [#allocation3], 1 }
 0x275   :  { %1552 = vsyncpa [#allocation3 + $0x1], 1 }
 0x276   :  { %1553 = vsyncpa [#allocation6], 1 }
 0x277   :  { %1555 = vsyncpa [#allocation6 + $0x1], 1 }
 0x278   :  { %1556 = vsyncpa [#allocation4], 1 }
 0x279   :  { %1558 = vsyncpa [#allocation4 + $0x1], 1 }

</bundles_post_ra>
